<compile_context>
chip_gen: v5e
topology: v5e:2x2
jax: 0.10.0
libtpu: 0.0.40
codegen_flags: <defaults>
</compile_context>

<pallas_src>
import functools
import math

import jax
import jax.numpy as jnp
from jax.experimental import pallas as pl
from jax.experimental.pallas import tpu as pltpu


def _round_up(x, m):
    return ((x + m - 1) // m) * m


# ---------------------------------------------------------------------------
# Kernel 1: feature projection  XW = x @ W  (computed exactly once per layer)
# ---------------------------------------------------------------------------
def _proj_kernel(x_ref, w_ref, xw_ref):
    xw_ref[...] = jnp.dot(
        x_ref[...].astype(w_ref.dtype), w_ref[...],
        preferred_element_type=jnp.float32,
    ).astype(xw_ref.dtype)


def _project(x_pad, w_pad, *, tile_m, out_dtype):
    n_pad, f_in_pad = x_pad.shape
    f_out_pad = w_pad.shape[1]
    grid = (n_pad // tile_m,)

    bytes_accessed = int(
        n_pad * f_in_pad * jnp.dtype(x_pad.dtype).itemsize
        + f_in_pad * f_out_pad * jnp.dtype(w_pad.dtype).itemsize
        + n_pad * f_out_pad * jnp.dtype(out_dtype).itemsize)

    return pl.pallas_call(
        _proj_kernel,
        out_shape=jax.ShapeDtypeStruct((n_pad, f_out_pad), out_dtype),
        grid_spec=pltpu.PrefetchScalarGridSpec(
            num_scalar_prefetch=0,
            grid=grid,
            in_specs=[
                pl.BlockSpec((tile_m, f_in_pad), lambda i: (i, 0)),       # x tile
                pl.BlockSpec((f_in_pad, f_out_pad), lambda i: (0, 0)),    # W resident
            ],
            out_specs=pl.BlockSpec((tile_m, f_out_pad), lambda i: (i, 0)),
        ),
        compiler_params=pltpu.CompilerParams(
            dimension_semantics=("parallel",)),
        cost_estimate=pl.CostEstimate(
            flops=int(2 * n_pad * f_in_pad * f_out_pad),
            transcendentals=0,
            bytes_accessed=bytes_accessed),
    )(x_pad, w_pad)


# ---------------------------------------------------------------------------
# Kernel 2: aggregation  out = activation(adj @ XW + bias)
#   grid = (row tiles i ["parallel"], reduction tiles k ["arbitrary"])
#   The f32 output block is the accumulator (block index constant over k).
# ---------------------------------------------------------------------------
def _agg_kernel(adj_ref, xw_ref, b_ref, o_ref, *, activation, valid_cols,
                xw_resident, tile_n):
    k = pl.program_id(1)

    @pl.when(k == 0)
    def _():
        o_ref[...] = jnp.zeros_like(o_ref)

    if xw_resident:
        start = pl.multiple_of(k * tile_n, tile_n)
        xw = xw_ref[pl.ds(start, tile_n), :]
    else:
        xw = xw_ref[...]

    o_ref[...] += jnp.dot(adj_ref[...], xw, preferred_element_type=jnp.float32)

    @pl.when(k == pl.num_programs(1) - 1)
    def _():
        out = o_ref[...] + b_ref[...]          # bias added exactly once
        if activation == "relu":
            out = jnp.maximum(out, 0.0)
        elif activation == "log_softmax":
            # Mask padded class columns so they do not contribute.
            col = jax.lax.broadcasted_iota(jnp.int32, out.shape, 1)
            out = jnp.where(col < valid_cols, out, -1e30)
            m = jnp.max(out, axis=-1, keepdims=True)
            shifted = out - m
            lse = jnp.log(jnp.sum(jnp.exp(shifted), axis=-1, keepdims=True))
            out = shifted - lse
        o_ref[...] = out


def _aggregate(adj_pad, xw_pad, bias_pad, *, activation, valid_cols, tile_n,
               xw_resident_budget=8 * 1024 * 1024):
    n_pad = adj_pad.shape[0]
    f_out_pad = xw_pad.shape[1]
    adj_isize = jnp.dtype(adj_pad.dtype).itemsize
    xw_isize = jnp.dtype(xw_pad.dtype).itemsize

    xw_resident = n_pad * f_out_pad * xw_isize <= xw_resident_budget
    grid = (n_pad // tile_n, n_pad // tile_n)

    if xw_resident:
        xw_spec = pl.BlockSpec((n_pad, f_out_pad), lambda i, k: (0, 0))
        xw_stream_bytes = n_pad * f_out_pad * xw_isize
        xw_vmem = 2 * n_pad * f_out_pad * xw_isize
    else:
        xw_spec = pl.BlockSpec((tile_n, f_out_pad), lambda i, k: (k, 0))
        xw_stream_bytes = (n_pad // tile_n) * n_pad * f_out_pad * xw_isize
        xw_vmem = 2 * tile_n * f_out_pad * xw_isize

    # VMEM footprint: double-buffered adj tiles + XW + resident f32 output + bias.
    vmem_needed = (2 * tile_n * tile_n * adj_isize
                   + xw_vmem
                   + 2 * tile_n * f_out_pad * 4
                   + 2 * 8 * f_out_pad * 4)
    # v7x-safe cap (64 MiB physical VMEM); plenty of headroom on v5e/v6e.
    vmem_limit = int(min(max(32 * 1024 * 1024, 2 * vmem_needed),
                         64 * 1024 * 1024))

    kernel = functools.partial(_agg_kernel, activation=activation,
                               valid_cols=valid_cols,
                               xw_resident=xw_resident, tile_n=tile_n)

    flops = int(2 * n_pad * n_pad * f_out_pad)
    transcendentals = int(n_pad * f_out_pad) if activation == "log_softmax" else 0
    bytes_accessed = int(n_pad * n_pad * adj_isize + xw_stream_bytes
                         + f_out_pad * 4 + n_pad * f_out_pad * 4)

    return pl.pallas_call(
        kernel,
        out_shape=jax.ShapeDtypeStruct((n_pad, f_out_pad), jnp.float32),
        grid_spec=pltpu.PrefetchScalarGridSpec(
            num_scalar_prefetch=0,
            grid=grid,
            in_specs=[
                pl.BlockSpec((tile_n, tile_n), lambda i, k: (i, k)),   # adj (streamed)
                xw_spec,                                               # XW
                pl.BlockSpec((1, f_out_pad), lambda i, k: (0, 0)),     # bias (resident)
            ],
            out_specs=pl.BlockSpec((tile_n, f_out_pad), lambda i, k: (i, 0)),
        ),
        compiler_params=pltpu.CompilerParams(
            dimension_semantics=("parallel", "arbitrary"),
            vmem_limit_bytes=vmem_limit,
        ),
        cost_estimate=pl.CostEstimate(
            flops=flops,
            transcendentals=transcendentals,
            bytes_accessed=bytes_accessed),
    )(adj_pad, xw_pad, bias_pad)


def _gcn_layer_padded(x_pad, adj_pad, w_pad, b_pad, *, activation, valid_cols,
                      tile_n, compute_dtype):
    """activation(adj_pad @ (x_pad @ w_pad) + b_pad), all operands pre-padded."""
    xw_pad = _project(x_pad, w_pad, tile_m=tile_n, out_dtype=compute_dtype)
    return _aggregate(adj_pad, xw_pad, b_pad, activation=activation,
                      valid_cols=valid_cols, tile_n=tile_n)


def spatial_gcn_forward(x, adj, params, *, tile_n=512, compute_dtype=None):
    """Inference forward of SpatialBasedGraphConvNet."""
    (w1, b1), (w2, b2) = params
    n, f_in = x.shape
    h_dim = w1.shape[1]
    n_class = w2.shape[1]
    assert adj.shape == (n, n)

    cdt = jnp.dtype(compute_dtype) if compute_dtype is not None else x.dtype

    n_pad = _round_up(n, tile_n)
    f_in_pad = _round_up(f_in, 128)
    h_pad = _round_up(h_dim, 128)
    c_pad = _round_up(n_class, 128)

    # Pad + cast ONCE (adj reused by both layers); zero padding keeps the valid
    # (n, f_out) region exact since padded adj columns / W rows are zero.
    adjp = jnp.pad(adj, ((0, n_pad - n), (0, n_pad - n))).astype(cdt)
    xp = jnp.pad(x, ((0, n_pad - n), (0, f_in_pad - f_in)))
    w1p = jnp.pad(w1, ((0, f_in_pad - f_in), (0, h_pad - h_dim))).astype(cdt)
    b1p = jnp.pad(b1.astype(jnp.float32), (0, h_pad - h_dim)).reshape(1, h_pad)
    w2p = jnp.pad(w2, ((0, h_pad - h_dim), (0, c_pad - n_class))).astype(cdt)
    b2p = jnp.pad(b2.astype(jnp.float32), (0, c_pad - n_class)).reshape(1, c_pad)

    # Layer 1: relu(adj @ (x @ W1) + b1) — kept in padded layout for layer 2.
    h = _gcn_layer_padded(xp, adjp, w1p, b1p, activation="relu",
                          valid_cols=h_dim, tile_n=tile_n, compute_dtype=cdt)
    # TODO(synk): training-mode dropout (pltpu.prng_*) not implemented; eval mode is identity.

    # Layer 2: log_softmax(adj @ (h @ W2) + b2, axis=1).
    z = _gcn_layer_padded(h, adjp, w2p, b2p, activation="log_softmax",
                          valid_cols=n_class, tile_n=tile_n, compute_dtype=cdt)
    return z[:n, :n_class]


def init_layer_params(key, in_features, out_features):
    """Mirror reset_parameters(): uniform(-stdv, stdv), stdv = 1/sqrt(out_features)."""
    stdv = 1.0 / math.sqrt(out_features)
    kw, kb = jax.random.split(key)
    weight = jax.random.uniform(kw, (in_features, out_features), jnp.float32,
                                minval=-stdv, maxval=stdv)
    bias = jax.random.uniform(kb, (out_features,), jnp.float32,
                              minval=-stdv, maxval=stdv)
    return weight, bias


if __name__ == "__main__":
    # Small deterministic example (module defaults: num_feature=10, num_class=27).
    N = 200            # number of graph nodes
    NUM_FEATURE = 10
    NUM_HIDDEN = 16
    NUM_CLASS = 27
    TILE_N = 128       # 2x2 grid at this N so the accumulate/finalize path is exercised

    key = jax.random.PRNGKey(0)
    k_x, k_adj, k_p1, k_p2 = jax.random.split(key, 4)

    x = jax.random.normal(k_x, (N, NUM_FEATURE), jnp.float32)
    adj_raw = jax.random.uniform(k_adj, (N, N), jnp.float32)
    adj = adj_raw / jnp.sum(adj_raw, axis=1, keepdims=True)   # row-normalized, as in the module

    params = (init_layer_params(k_p1, NUM_FEATURE, NUM_HIDDEN),
              init_layer_params(k_p2, NUM_HIDDEN, NUM_CLASS))

    # f32 path (exact check against the plain-JAX reference).
    fwd = jax.jit(functools.partial(spatial_gcn_forward, tile_n=TILE_N))
    out = jax.block_until_ready(fwd(x, adj, params))

    # Pure-JAX reference (same math as the torch forward in eval mode).
    (w1, b1), (w2, b2) = params
    h_ref = jnp.maximum(adj @ (x @ w1) + b1[None, :], 0.0)
    z_ref = adj @ (h_ref @ w2) + b2[None, :]
    ref = jax.nn.log_softmax(z_ref, axis=1)

    assert out.shape == (N, NUM_CLASS)
    assert bool(jnp.all(jnp.isfinite(out)))
    assert jnp.allclose(out, ref, atol=1e-3, rtol=1e-3)

    # bf16-streaming path (recommended production config on v5e/v6e/v7x):
    # adj/W/XW stream in bf16, accumulation stays f32.
    fwd_bf16 = jax.jit(functools.partial(spatial_gcn_forward, tile_n=TILE_N,
                                         compute_dtype=jnp.bfloat16))
    out_bf16 = jax.block_until_ready(fwd_bf16(x, adj, params))
    assert out_bf16.shape == (N, NUM_CLASS)
    assert bool(jnp.all(jnp.isfinite(out_bf16)))
    assert float(jnp.max(jnp.abs(out_bf16 - ref))) < 0.5   # bf16 adj quantization error

    print("KERNEL_OK")
</pallas_src>

<mosaic_0001>
module attributes {stable_mosaic.version = 11 : i64} {
  func.func @_proj_kernel(%arg0: i32, %arg1: memref<128x128xf32, #tpu.memory_space<vmem>>, %arg2: memref<128x128xf32, #tpu.memory_space<vmem>>, %arg3: memref<128x128xf32, #tpu.memory_space<vmem>>) attributes {dimension_semantics = [#tpu.dimension_semantics<parallel>], iteration_bounds = array<i64: 2>, scalar_prefetch = 0 : i64, scratch_operands = 0 : i64, tpu.core_type = #tpu.core_type<tc>, window_params = [{transform_indices = @transform_0, window_bounds = array<i64: 128, 128>}, {pipeline_mode = #tpu.pipeline_mode<synchronous>, transform_indices = @transform_1, window_bounds = array<i64: 128, 128>}, {transform_indices = @transform_2, window_bounds = array<i64: 128, 128>}]} {
    %c0 = arith.constant 0 : index
    %c0_0 = arith.constant 0 : index
    %0 = vector.load %arg1[%c0, %c0_0] : memref<128x128xf32, #tpu.memory_space<vmem>>, vector<128x128xf32>
    %c0_1 = arith.constant 0 : index
    %c0_2 = arith.constant 0 : index
    %1 = vector.load %arg2[%c0_1, %c0_2] : memref<128x128xf32, #tpu.memory_space<vmem>>, vector<128x128xf32>
    %cst = arith.constant dense<0.000000e+00> : vector<128x128xf32>
    %2 = tpu.matmul %0, %1, %cst {dimension_numbers = #tpu.dot_dimension_numbers<[1], [0], [0], [1], [0, 0, 1, 1], [], []>} : vector<128x128xf32>, vector<128x128xf32>, vector<128x128xf32> -> vector<128x128xf32>
    %c0_3 = arith.constant 0 : index
    %c0_4 = arith.constant 0 : index
    %3 = vector.load %arg3[%c0_3, %c0_4] : memref<128x128xf32, #tpu.memory_space<vmem>>, vector<128x128xf32>
    tpu.vector_store %arg3[%c0_3, %c0_4], %2 {strides = array<i32>} : memref<128x128xf32, #tpu.memory_space<vmem>>, vector<128x128xf32>,
    return
  }
  func.func @transform_0(%arg0: i32) -> (i32, i32) {
    %c0_i32 = arith.constant 0 : i32
    %c0_i32_0 = arith.constant 0 : i32
    return %arg0, %c0_i32 : i32, i32
  }
  func.func @transform_1(%arg0: i32) -> (i32, i32) {
    %c0_i32 = arith.constant 0 : i32
    %c0_i32_0 = arith.constant 0 : i32
    %c0_i32_1 = arith.constant 0 : i32
    return %c0_i32, %c0_i32_0 : i32, i32
  }
  func.func @transform_2(%arg0: i32) -> (i32, i32) {
    %c0_i32 = arith.constant 0 : i32
    %c0_i32_0 = arith.constant 0 : i32
    return %arg0, %c0_i32 : i32, i32
  }
}

module attributes {stable_mosaic.version = 11 : i64} {
  func.func @_agg_kernel(%arg0: i32, %arg1: i32, %arg2: memref<128x128xf32, #tpu.memory_space<vmem>>, %arg3: memref<256x128xf32, #tpu.memory_space<vmem>>, %arg4: memref<1x128xf32, #tpu.memory_space<vmem>>, %arg5: memref<128x128xf32, #tpu.memory_space<vmem>>) attributes {dimension_semantics = [#tpu.dimension_semantics<parallel>, #tpu.dimension_semantics<arbitrary>], iteration_bounds = array<i64: 2, 2>, scalar_prefetch = 0 : i64, scratch_operands = 0 : i64, tpu.core_type = #tpu.core_type<tc>, window_params = [{transform_indices = @transform_0, window_bounds = array<i64: 128, 128>}, {pipeline_mode = #tpu.pipeline_mode<synchronous>, transform_indices = @transform_1, window_bounds = array<i64: 256, 128>}, {pipeline_mode = #tpu.pipeline_mode<synchronous>, transform_indices = @transform_2, window_bounds = array<i64: 1, 128>}, {transform_indices = @transform_3, window_bounds = array<i64: 128, 128>}]} {
    %c0_i32 = arith.constant 0 : i32
    %0 = arith.cmpi eq, %arg1, %c0_i32 : i32
    %1 = arith.extui %0 : i1 to i32
    %c0_i32_0 = arith.constant 0 : i32
    %2 = arith.cmpi ne, %1, %c0_i32_0 : i32
    scf.if %2 {
      %cst_8 = arith.constant 0.000000e+00 : f32
      %15 = vector.broadcast %cst_8 : f32 to vector<128x128xf32>
      %c0_9 = arith.constant 0 : index
      %c0_10 = arith.constant 0 : index
      %16 = vector.load %arg5[%c0_9, %c0_10] : memref<128x128xf32, #tpu.memory_space<vmem>>, vector<128x128xf32>
      tpu.vector_store %arg5[%c0_9, %c0_10], %15 {strides = array<i32>} : memref<128x128xf32, #tpu.memory_space<vmem>>, vector<128x128xf32>,
    } else {
    }
    %c128_i32 = arith.constant 128 : i32
    %3 = arith.muli %arg1, %c128_i32 : i32
    %4 = tpu.assume_multiple %3, 128 : i32
    %5 = arith.index_cast %4 : i32 to index
    %c0 = arith.constant 0 : index
    %6 = vector.load %arg3[%5, %c0] : memref<256x128xf32, #tpu.memory_space<vmem>>, vector<128x128xf32>
    %c0_1 = arith.constant 0 : index
    %c0_2 = arith.constant 0 : index
    %7 = vector.load %arg5[%c0_1, %c0_2] : memref<128x128xf32, #tpu.memory_space<vmem>>, vector<128x128xf32>
    %c0_3 = arith.constant 0 : index
    %c0_4 = arith.constant 0 : index
    %8 = vector.load %arg2[%c0_3, %c0_4] : memref<128x128xf32, #tpu.memory_space<vmem>>, vector<128x128xf32>
    %cst = arith.constant dense<0.000000e+00> : vector<128x128xf32>
    %9 = tpu.matmul %8, %6, %cst {dimension_numbers = #tpu.dot_dimension_numbers<[1], [0], [0], [1], [0, 0, 1, 1], [], []>} : vector<128x128xf32>, vector<128x128xf32>, vector<128x128xf32> -> vector<128x128xf32>
    %10 = arith.addf %7, %9 : vector<128x128xf32>
    %c0_5 = arith.constant 0 : index
    %c0_6 = arith.constant 0 : index
    %11 = vector.load %arg5[%c0_5, %c0_6] : memref<128x128xf32, #tpu.memory_space<vmem>>, vector<128x128xf32>
    tpu.vector_store %arg5[%c0_5, %c0_6], %10 {strides = array<i32>} : memref<128x128xf32, #tpu.memory_space<vmem>>, vector<128x128xf32>,
    %c1_i32 = arith.constant 1 : i32
    %12 = arith.cmpi eq, %arg1, %c1_i32 : i32
    %13 = arith.extui %12 : i1 to i32
    %c0_i32_7 = arith.constant 0 : i32
    %14 = arith.cmpi ne, %13, %c0_i32_7 : i32
    scf.if %14 {
      %c0_8 = arith.constant 0 : index
      %c0_9 = arith.constant 0 : index
      %15 = vector.load %arg5[%c0_8, %c0_9] : memref<128x128xf32, #tpu.memory_space<vmem>>, vector<128x128xf32>
      %c0_10 = arith.constant 0 : index
      %c0_11 = arith.constant 0 : index
      %16 = vector.load %arg4[%c0_10, %c0_11] : memref<1x128xf32, #tpu.memory_space<vmem>>, vector<1x128xf32>
      %17 = vector.broadcast %16 : vector<1x128xf32> to vector<128x128xf32>
      %18 = arith.addf %15, %17 : vector<128x128xf32>
      %19 = tpu.iota {dimensions = array<i32: 1>} : vector<128x128xi32>
      %c27_i32 = arith.constant 27 : i32
      %20 = vector.broadcast %c27_i32 : i32 to vector<128x128xi32>
      %21 = arith.cmpi slt, %19, %20 : vector<128x128xi32>
      %cst_12 = arith.constant -1.000000e+30 : f32
      %22 = vector.broadcast %cst_12 : f32 to vector<128x128xf32>
      %23 = arith.select %21, %18, %22 : vector<128x128xi1>, vector<128x128xf32>
      %cst_13 = arith.constant dense<0xFF800000> : vector<128xf32>
      %24 = vector.multi_reduction <maximumf>, %23, %cst_13 [1] : vector<128x128xf32> to vector<128xf32>
      %25 = vector.shape_cast %24 : vector<128xf32> to vector<128x1xf32>
      %26 = vector.broadcast %25 : vector<128x1xf32> to vector<128x128xf32>
      %27 = arith.subf %23, %26 : vector<128x128xf32>
      %28 = math.exp %27 : vector<128x128xf32>
      %cst_14 = arith.constant dense<0.000000e+00> : vector<128xf32>
      %29 = vector.multi_reduction <add>, %28, %cst_14 [1] : vector<128x128xf32> to vector<128xf32>
      %30 = vector.shape_cast %29 : vector<128xf32> to vector<128x1xf32>
      %31 = math.log %30 : vector<128x1xf32>
      %32 = vector.broadcast %31 : vector<128x1xf32> to vector<128x128xf32>
      %33 = arith.subf %27, %32 : vector<128x128xf32>
      %c0_15 = arith.constant 0 : index
      %c0_16 = arith.constant 0 : index
      %34 = vector.load %arg5[%c0_15, %c0_16] : memref<128x128xf32, #tpu.memory_space<vmem>>, vector<128x128xf32>
      tpu.vector_store %arg5[%c0_15, %c0_16], %33 {strides = array<i32>} : memref<128x128xf32, #tpu.memory_space<vmem>>, vector<128x128xf32>,
    } else {
    }
    return
  }
  func.func @transform_0(%arg0: i32, %arg1: i32) -> (i32, i32) {
    %c0_i32 = arith.constant 0 : i32
    return %arg0, %arg1 : i32, i32
  }
  func.func @transform_1(%arg0: i32, %arg1: i32) -> (i32, i32) {
    %c0_i32 = arith.constant 0 : i32
    %c0_i32_0 = arith.constant 0 : i32
    %c0_i32_1 = arith.constant 0 : i32
    return %c0_i32, %c0_i32_0 : i32, i32
  }
  func.func @transform_2(%arg0: i32, %arg1: i32) -> (i32, i32) {
    %c0_i32 = arith.constant 0 : i32
    %c0_i32_0 = arith.constant 0 : i32
    %c0_i32_1 = arith.constant 0 : i32
    return %c0_i32, %c0_i32_0 : i32, i32
  }
  func.func @transform_3(%arg0: i32, %arg1: i32) -> (i32, i32) {
    %c0_i32 = arith.constant 0 : i32
    %c0_i32_0 = arith.constant 0 : i32
    return %arg0, %c0_i32 : i32, i32
  }
}

module attributes {stable_mosaic.version = 11 : i64} {
  func.func @_agg_kernel(%arg0: i32, %arg1: i32, %arg2: memref<128x128xf32, #tpu.memory_space<vmem>>, %arg3: memref<256x128xf32, #tpu.memory_space<vmem>>, %arg4: memref<1x128xf32, #tpu.memory_space<vmem>>, %arg5: memref<128x128xf32, #tpu.memory_space<vmem>>) attributes {dimension_semantics = [#tpu.dimension_semantics<parallel>, #tpu.dimension_semantics<arbitrary>], iteration_bounds = array<i64: 2, 2>, scalar_prefetch = 0 : i64, scratch_operands = 0 : i64, tpu.core_type = #tpu.core_type<tc>, window_params = [{transform_indices = @transform_0, window_bounds = array<i64: 128, 128>}, {pipeline_mode = #tpu.pipeline_mode<synchronous>, transform_indices = @transform_1, window_bounds = array<i64: 256, 128>}, {pipeline_mode = #tpu.pipeline_mode<synchronous>, transform_indices = @transform_2, window_bounds = array<i64: 1, 128>}, {transform_indices = @transform_3, window_bounds = array<i64: 128, 128>}]} {
    %c0_i32 = arith.constant 0 : i32
    %0 = arith.cmpi eq, %arg1, %c0_i32 : i32
    %1 = arith.extui %0 : i1 to i32
    %c0_i32_0 = arith.constant 0 : i32
    %2 = arith.cmpi ne, %1, %c0_i32_0 : i32
    scf.if %2 {
      %cst_8 = arith.constant 0.000000e+00 : f32
      %15 = vector.broadcast %cst_8 : f32 to vector<128x128xf32>
      %c0_9 = arith.constant 0 : index
      %c0_10 = arith.constant 0 : index
      %16 = vector.load %arg5[%c0_9, %c0_10] : memref<128x128xf32, #tpu.memory_space<vmem>>, vector<128x128xf32>
      tpu.vector_store %arg5[%c0_9, %c0_10], %15 {strides = array<i32>} : memref<128x128xf32, #tpu.memory_space<vmem>>, vector<128x128xf32>,
    } else {
    }
    %c128_i32 = arith.constant 128 : i32
    %3 = arith.muli %arg1, %c128_i32 : i32
    %4 = tpu.assume_multiple %3, 128 : i32
    %5 = arith.index_cast %4 : i32 to index
    %c0 = arith.constant 0 : index
    %6 = vector.load %arg3[%5, %c0] : memref<256x128xf32, #tpu.memory_space<vmem>>, vector<128x128xf32>
    %c0_1 = arith.constant 0 : index
    %c0_2 = arith.constant 0 : index
    %7 = vector.load %arg5[%c0_1, %c0_2] : memref<128x128xf32, #tpu.memory_space<vmem>>, vector<128x128xf32>
    %c0_3 = arith.constant 0 : index
    %c0_4 = arith.constant 0 : index
    %8 = vector.load %arg2[%c0_3, %c0_4] : memref<128x128xf32, #tpu.memory_space<vmem>>, vector<128x128xf32>
    %cst = arith.constant dense<0.000000e+00> : vector<128x128xf32>
    %9 = tpu.matmul %8, %6, %cst {dimension_numbers = #tpu.dot_dimension_numbers<[1], [0], [0], [1], [0, 0, 1, 1], [], []>} : vector<128x128xf32>, vector<128x128xf32>, vector<128x128xf32> -> vector<128x128xf32>
    %10 = arith.addf %7, %9 : vector<128x128xf32>
    %c0_5 = arith.constant 0 : index
    %c0_6 = arith.constant 0 : index
    %11 = vector.load %arg5[%c0_5, %c0_6] : memref<128x128xf32, #tpu.memory_space<vmem>>, vector<128x128xf32>
    tpu.vector_store %arg5[%c0_5, %c0_6], %10 {strides = array<i32>} : memref<128x128xf32, #tpu.memory_space<vmem>>, vector<128x128xf32>,
    %c1_i32 = arith.constant 1 : i32
    %12 = arith.cmpi eq, %arg1, %c1_i32 : i32
    %13 = arith.extui %12 : i1 to i32
    %c0_i32_7 = arith.constant 0 : i32
    %14 = arith.cmpi ne, %13, %c0_i32_7 : i32
    scf.if %14 {
      %c0_8 = arith.constant 0 : index
      %c0_9 = arith.constant 0 : index
      %15 = vector.load %arg5[%c0_8, %c0_9] : memref<128x128xf32, #tpu.memory_space<vmem>>, vector<128x128xf32>
      %c0_10 = arith.constant 0 : index
      %c0_11 = arith.constant 0 : index
      %16 = vector.load %arg4[%c0_10, %c0_11] : memref<1x128xf32, #tpu.memory_space<vmem>>, vector<1x128xf32>
      %17 = vector.broadcast %16 : vector<1x128xf32> to vector<128x128xf32>
      %18 = arith.addf %15, %17 : vector<128x128xf32>
      %cst_12 = arith.constant 0.000000e+00 : f32
      %19 = vector.broadcast %cst_12 : f32 to vector<128x128xf32>
      %20 = arith.maximumf %18, %19 : vector<128x128xf32>
      %c0_13 = arith.constant 0 : index
      %c0_14 = arith.constant 0 : index
      %21 = vector.load %arg5[%c0_13, %c0_14] : memref<128x128xf32, #tpu.memory_space<vmem>>, vector<128x128xf32>
      tpu.vector_store %arg5[%c0_13, %c0_14], %20 {strides = array<i32>} : memref<128x128xf32, #tpu.memory_space<vmem>>, vector<128x128xf32>,
    } else {
    }
    return
  }
  func.func @transform_0(%arg0: i32, %arg1: i32) -> (i32, i32) {
    %c0_i32 = arith.constant 0 : i32
    return %arg0, %arg1 : i32, i32
  }
  func.func @transform_1(%arg0: i32, %arg1: i32) -> (i32, i32) {
    %c0_i32 = arith.constant 0 : i32
    %c0_i32_0 = arith.constant 0 : i32
    %c0_i32_1 = arith.constant 0 : i32
    return %c0_i32, %c0_i32_0 : i32, i32
  }
  func.func @transform_2(%arg0: i32, %arg1: i32) -> (i32, i32) {
    %c0_i32 = arith.constant 0 : i32
    %c0_i32_0 = arith.constant 0 : i32
    %c0_i32_1 = arith.constant 0 : i32
    return %c0_i32, %c0_i32_0 : i32, i32
  }
  func.func @transform_3(%arg0: i32, %arg1: i32) -> (i32, i32) {
    %c0_i32 = arith.constant 0 : i32
    %c0_i32_0 = arith.constant 0 : i32
    return %arg0, %c0_i32 : i32, i32
  }
}

</mosaic_0001>

<bundles_post_ra>
// kernel: spatial_gcn_forward.4
= control target key start
LH: loop header
LB: loop body
LE: loop exit
PB: predicated region body
PF: predicated region fallthrough
CT: control target
= control target key end

     0   :  { %s406_s9 = smov 0   ;;  %s516_s0 = inlined_call_operand.vmem [shape: f32[256,128], index: 0, kind: input, shape index: {}]   ;;  %s517_s1 = inlined_call_operand.vmem [shape: f32[128,128], index: 1, kind: input, shape index: {}]   ;;  %s518_s2 = inlined_call_operand.vmem [shape: f32[256,128], index: 2, kind: output, shape index: {}]  }
   0x1 LB: > { %s316_s10 = sadd.s32 4294967295, %s389_s9   ;;  %p320_p0 = scmp.ge.s32.totalorder %s389_s9, 1  ;;  %s389_s9 = sphi %s406_s9, %s12_s9  }
   0x2   : > { %p113_p1 = scmp.lt.s32.totalorder %s389_s9, 3 }
   0x4   : > { %p114_p2 = pnand %p320_p0, %p113_p1 }
   0x5   : > { %s321_s27 = sshll.u32 (!%p114_p2), %s316_s10, 4 }
   0x6   : > { %117 = sbr.rel (%p114_p2) target bundleno = 201 (0xc9), region = 28  ;;  %p136_p3 = scmp.lt.s32.totalorder (!%p114_p2), %s321_s27, 31 }
   0xb   : > { %v178_v0 = vld [vmem:[%s517_s1 + $0x78] sm:$0xff]  ;;  %v177_v1 = vld [vmem:[%s517_s1 + $0x70] sm:$0xff]  ;;  %v176_v2 = vld [vmem:[%s517_s1 + $0x68] sm:$0xff]  ;;  %s520_s27 = smov (!%p136_p3, %s321_s27), 31 }
   0xc   : > { %328 = vmatpush.msra.mxu2 %v178_v0  ;;  %329 = vmatpush.msra.mxu3 %v178_v0  ;;  %v175_v3 = vld [vmem:[%s517_s1 + $0x60] sm:$0xff]  ;;  %v174_v4 = vld [vmem:[%s517_s1 + $0x58] sm:$0xff]  ;;  %v173_v5 = vld [vmem:[%s517_s1 + $0x50] sm:$0xff]  ;;  %s322_s11 = sshll.u32 %s520_s27, 3 }
   0xd   : > { %179 = vmatpush.msra.mxu0 %v178_v0  ;;  %327 = vmatpush.msra.mxu1 %v178_v0  ;;  %v172_v6 = vld [vmem:[%s517_s1 + $0x48] sm:$0xff]  ;;  %v171_v7 = vld [vmem:[%s517_s1 + $0x40] sm:$0xff]  ;;  %v170_v8 = vld [vmem:[%s517_s1 + $0x38] sm:$0xff]  ;;  %s469_s18 = scalar_lea.vmem %s516_s0, %s322_s11  ;;  %s495_s23 = scalar_lea.vmem %s518_s2, %s322_s11 }
   0xe   : > { %331 = vmatpush.msra.mxu2 %v177_v1  ;;  %332 = vmatpush.msra.mxu3 %v177_v1  ;;  %v169_v9 = vld [vmem:[%s517_s1 + $0x30] sm:$0xff]  ;;  %v168_v10 = vld [vmem:[%s517_s1 + $0x28] sm:$0xff]  ;;  %v167_v11 = vld [vmem:[%s517_s1 + $0x20] sm:$0xff] }
   0xf   : > { %180 = vmatpush.msra.mxu0 %v177_v1  ;;  %330 = vmatpush.msra.mxu1 %v177_v1  ;;  %v166_v12 = vld [vmem:[%s517_s1 + $0x18] sm:$0xff]  ;;  %v165_v13 = vld [vmem:[%s517_s1 + $0x10] sm:$0xff]  ;;  %v164_v14 = vld [vmem:[%s517_s1 + $0x8] sm:$0xff] }
  0x10   : > { %334 = vmatpush.msra.mxu2 %v176_v2  ;;  %335 = vmatpush.msra.mxu3 %v176_v2  ;;  %v163_v15 = vld [vmem:[%s517_s1] sm:$0xff]  ;;  %v156_v20 = vld [vmem:[%s469_s18 + $0x48] sm:$0xff]  ;;  %v157_v24 = vld [vmem:[%s469_s18 + $0x50] sm:$0xff] }
  0x11   : > { %181 = vmatpush.msra.mxu0 %v176_v2  ;;  %333 = vmatpush.msra.mxu1 %v176_v2  ;;  %v155_v16 = vld [vmem:[%s469_s18 + $0x40] sm:$0xff]  ;;  %v160_v21 = vld [vmem:[%s469_s18 + $0x68] sm:$0xff]  ;;  %v161_v25 = vld [vmem:[%s469_s18 + $0x70] sm:$0xff] }
  0x12   : > { %337 = vmatpush.msra.mxu2 %v175_v3  ;;  %338 = vmatpush.msra.mxu3 %v175_v3  ;;  %v159_v17 = vld [vmem:[%s469_s18 + $0x60] sm:$0xff]  ;;  %v148_v22 = vld [vmem:[%s469_s18 + $0x8] sm:$0xff]  ;;  %v149_v26 = vld [vmem:[%s469_s18 + $0x10] sm:$0xff] }
  0x13   : > { %182 = vmatpush.msra.mxu0 %v175_v3  ;;  %336 = vmatpush.msra.mxu1 %v175_v3  ;;  %v147_v18 = vld [vmem:[%s469_s18] sm:$0xff]  ;;  %v152_v23 = vld [vmem:[%s469_s18 + $0x28] sm:$0xff]  ;;  %v153_v27 = vld [vmem:[%s469_s18 + $0x30] sm:$0xff] }
  0x14   : > { %340 = vmatpush.msra.mxu2 %v174_v4  ;;  %341 = vmatpush.msra.mxu3 %v174_v4  ;;  %v151_v19 = vld [vmem:[%s469_s18 + $0x20] sm:$0xff]  ;;  %v158_v28 = vld [vmem:[%s469_s18 + $0x58] sm:$0xff] }
  0x15   : > { %183 = vmatpush.msra.mxu0 %v174_v4  ;;  %339 = vmatpush.msra.mxu1 %v174_v4  ;;  %v162_v29 = vld [vmem:[%s469_s18 + $0x78] sm:$0xff] }
  0x16   : > { %343 = vmatpush.msra.mxu2 %v173_v5  ;;  %344 = vmatpush.msra.mxu3 %v173_v5  ;;  %v150_v30 = vld [vmem:[%s469_s18 + $0x18] sm:$0xff] }
  0x17   : > { %184 = vmatpush.msra.mxu0 %v173_v5  ;;  %342 = vmatpush.msra.mxu1 %v173_v5  ;;  %v154_v31 = vld [vmem:[%s469_s18 + $0x38] sm:$0xff] }
  0x18   : > { %346 = vmatpush.msra.mxu2 %v172_v6  ;;  %347 = vmatpush.msra.mxu3 %v172_v6 }
  0x19   : > { %185 = vmatpush.msra.mxu0 %v172_v6  ;;  %345 = vmatpush.msra.mxu1 %v172_v6 }
  0x1a   : > { %349 = vmatpush.msra.mxu2 %v171_v7  ;;  %350 = vmatpush.msra.mxu3 %v171_v7 }
  0x1b   : > { %186 = vmatpush.msra.mxu0 %v171_v7  ;;  %348 = vmatpush.msra.mxu1 %v171_v7 }
  0x1c   : > { %352 = vmatpush.msra.mxu2 %v170_v8  ;;  %353 = vmatpush.msra.mxu3 %v170_v8 }
  0x1d   : > { %187 = vmatpush.msra.mxu0 %v170_v8  ;;  %351 = vmatpush.msra.mxu1 %v170_v8 }
  0x1e   : > { %355 = vmatpush.msra.mxu2 %v169_v9  ;;  %356 = vmatpush.msra.mxu3 %v169_v9 }
  0x1f   : > { %188 = vmatpush.msra.mxu0 %v169_v9  ;;  %354 = vmatpush.msra.mxu1 %v169_v9 }
  0x20   : > { %358 = vmatpush.msra.mxu2 %v168_v10  ;;  %359 = vmatpush.msra.mxu3 %v168_v10 }
  0x21   : > { %189 = vmatpush.msra.mxu0 %v168_v10  ;;  %357 = vmatpush.msra.mxu1 %v168_v10 }
  0x22   : > { %361 = vmatpush.msra.mxu2 %v167_v11  ;;  %362 = vmatpush.msra.mxu3 %v167_v11 }
  0x23   : > { %190 = vmatpush.msra.mxu0 %v167_v11  ;;  %360 = vmatpush.msra.mxu1 %v167_v11 }
  0x24   : > { %364 = vmatpush.msra.mxu2 %v166_v12  ;;  %365 = vmatpush.msra.mxu3 %v166_v12 }
  0x25   : > { %191 = vmatpush.msra.mxu0 %v166_v12  ;;  %363 = vmatpush.msra.mxu1 %v166_v12 }
  0x26   : > { %367 = vmatpush.msra.mxu2 %v165_v13  ;;  %368 = vmatpush.msra.mxu3 %v165_v13 }
  0x27   : > { %192 = vmatpush.msra.mxu0 %v165_v13  ;;  %366 = vmatpush.msra.mxu1 %v165_v13 }
  0x28   : > { %370 = vmatpush.msra.mxu2 %v164_v14  ;;  %371 = vmatpush.msra.mxu3 %v164_v14 }
  0x29   : > { %193 = vmatpush.msra.mxu0 %v164_v14  ;;  %369 = vmatpush.msra.mxu1 %v164_v14 }
  0x2a   : > { %373 = vmatpush.msra.mxu2 %v163_v15  ;;  %374 = vmatpush.msra.mxu3 %v163_v15 }
  0x2b   : > { %219 = vmatmul.f32.vlgmr.msra.gmra.mxu2 %v155_v16  ;;  %231 = vmatmul.f32.vlgmr.msra.gmra.mxu3 %v159_v17 }
  0x2c   : > { %194 = vmatpush.msra.mxu0 %v163_v15  ;;  %372 = vmatpush.msra.mxu1 %v163_v15 }
  0x2d   : > { %195 = vmatmul.f32.vlgmr.msra.gmra.mxu0 %v147_v18  ;;  %207 = vmatmul.f32.vlgmr.msra.gmra.mxu1 %v151_v19 }
  0x33   : > { %222 = vmatmul.f32.gmra.mxu2 %v156_v20  ;;  %234 = vmatmul.f32.gmra.mxu3 %v160_v21 }
  0x35   : > { %198 = vmatmul.f32.gmra.mxu0 %v148_v22  ;;  %210 = vmatmul.f32.gmra.mxu1 %v152_v23 }
  0x3b   : > { %225 = vmatmul.f32.gmra.mxu2 %v157_v24  ;;  %237 = vmatmul.f32.gmra.mxu3 %v161_v25 }
  0x3d   : > { %201 = vmatmul.f32.gmra.mxu0 %v149_v26  ;;  %213 = vmatmul.f32.gmra.mxu1 %v153_v27 }
  0x43   : > { %228 = vmatmul.f32.gmra.mxu2 %v158_v28  ;;  %240 = vmatmul.f32.gmra.mxu3 %v162_v29 }
  0x45   : > { %204 = vmatmul.f32.gmra.mxu0 %v150_v30  ;;  %216 = vmatmul.f32.gmra.mxu1 %v154_v31 }
  0xaa   : > { %v196_v32 = vpop.f32.mrf.mxu0  ;;  %v208_v33 = vpop.f32.mrf.mxu1 }
  0xab   : > { %244 = vst [vmem:[%s495_s23] sm:$0xff] %v196_v32 }
  0xac   : > { %248 = vst [vmem:[%s495_s23 + $0x20] sm:$0xff] %v208_v33 }
  0xae   : > { %v220_v34 = vpop.f32.mrf.mxu2  ;;  %v232_v35 = vpop.f32.mrf.mxu3 }
  0xaf   : > { %252 = vst [vmem:[%s495_s23 + $0x40] sm:$0xff] %v220_v34 }
  0xb0   : > { %256 = vst [vmem:[%s495_s23 + $0x60] sm:$0xff] %v232_v35 }
  0xb2   : > { %v199_v36 = vpop.f32.mrf.mxu0  ;;  %v211_v37 = vpop.f32.mrf.mxu1 }
  0xb3   : > { %245 = vst [vmem:[%s495_s23 + $0x8] sm:$0xff] %v199_v36 }
  0xb4   : > { %249 = vst [vmem:[%s495_s23 + $0x28] sm:$0xff] %v211_v37 }
  0xb6   : > { %v223_v38 = vpop.f32.mrf.mxu2  ;;  %v235_v39 = vpop.f32.mrf.mxu3 }
  0xb7   : > { %253 = vst [vmem:[%s495_s23 + $0x48] sm:$0xff] %v223_v38 }
  0xb8   : > { %257 = vst [vmem:[%s495_s23 + $0x68] sm:$0xff] %v235_v39 }
  0xba   : > { %v202_v40 = vpop.f32.mrf.mxu0  ;;  %v214_v41 = vpop.f32.mrf.mxu1 }
  0xbb   : > { %246 = vst [vmem:[%s495_s23 + $0x10] sm:$0xff] %v202_v40 }
  0xbc   : > { %250 = vst [vmem:[%s495_s23 + $0x30] sm:$0xff] %v214_v41 }
  0xbe   : > { %v226_v42 = vpop.f32.mrf.mxu2  ;;  %v238_v43 = vpop.f32.mrf.mxu3 }
  0xbf   : > { %254 = vst [vmem:[%s495_s23 + $0x50] sm:$0xff] %v226_v42 }
  0xc0   : > { %258 = vst [vmem:[%s495_s23 + $0x70] sm:$0xff] %v238_v43 }
  0xc2   : > { %v205_v44 = vpop.f32.mrf.mxu0  ;;  %v217_v45 = vpop.f32.mrf.mxu1 }
  0xc3   : > { %247 = vst [vmem:[%s495_s23 + $0x18] sm:$0xff] %v205_v44 }
  0xc4   : > { %251 = vst [vmem:[%s495_s23 + $0x38] sm:$0xff] %v217_v45 }
  0xc6   : > { %v229_v46 = vpop.f32.mrf.mxu2  ;;  %v241_v47 = vpop.f32.mrf.mxu3 }
  0xc7   : > { %255 = vst [vmem:[%s495_s23 + $0x58] sm:$0xff] %v229_v46 }
  0xc8   : > { %259 = vst [vmem:[%s495_s23 + $0x78] sm:$0xff] %v241_v47 }
  0xc9 PF: > { %s12_s9 = sadd.s32 1, %s389_s9  }
  0xca   : > { %p9_p4 = scmp.ge.s32.totalorder %s12_s9, 4  }
  0xcc   :  { %11 = sbr.rel (!%p9_p4) target bundleno = 1 (0x1), region = 58 }

// kernel: spatial_gcn_forward.7
= control target key start
LH: loop header
LB: loop body
LE: loop exit
PB: predicated region body
PF: predicated region fallthrough
CT: control target
= control target key end

     0   :  { %s1030_s12 = smov 0   ;;  %s1032_s13 = smov 0   ;;  %s1397_s0 = inlined_call_operand.vmem [shape: f32[256,256], index: 0, kind: input, shape index: {}]   ;;  %s1398_s1 = inlined_call_operand.vmem [shape: f32[256,128], index: 1, kind: input, shape index: {}]   ;;  %s1399_s2 = inlined_call_operand.vmem [shape: f32[1,128], index: 2, kind: input, shape index: {}]   ;;  %s1400_s3 = inlined_call_operand.vmem [shape: f32[256,128], index: 3, kind: output, shape index: {}]  }
   0x1   :  { %s1034_s14 = smov 0   ;;  %s1036_s15 = smov 0  }
   0x2   :  { %s1038_s16 = smov 0   ;;  %s1040_s17 = smov 0  }
   0x3   :  { %s1042_s18 = smov 0  }
   0x4 LB: > { %s22_s19 = sadd.s32 1, %s999_s16  ;;  %s25_s20 = sadd.s32 1, %s1003_s17  ;;  %s1007_s18 = sphi %s1042_s18, %s13_s18   ;;  %s1003_s17 = sphi %s1040_s17, %s1406_s17   ;;  %s999_s16 = sphi %s1038_s16, %s1405_s16   ;;  %s995_s15 = sphi %s1036_s15, %s1404_s15   ;;  %s991_s14 = sphi %s1034_s14, %s1403_s14   ;;  %s987_s13 = sphi %s1032_s13, %s1402_s13   ;;  %s983_s12 = sphi %s1030_s12, %s1401_s12  }
   0x5   : > { %p23_p0 = scmp.ge.s32.totalorder %s22_s19, 2  ;;  %p41_p1 = scmp.ne.s32.totalorder %s987_s13, %s983_s12 }
   0x6   : > { %p42_p2 = scmp.eq.s32.totalorder %s1007_s18, 0  ;;  %s34_s24 = sadd.s32 1, %s987_s13 }
   0x7   : > { %s1408_s19 = smov (%p23_p0, %s22_s19), 0  ;;  %s1410_s20 = smov (!%p23_p0, %s25_s20), %s1003_s17 }
   0x8   : > { %p43_p3 = por %p42_p2, %p41_p1  ;;  %p27_p4 = scmp.ge.s32.totalorder %s1410_s20, 2 }
   0x9   : > { %s30_s21 = ssub.s32 %s999_s16, %s1408_s19  ;;  %p768_p6 = scmp.ge.s32.totalorder %s1007_s18, 4 }
   0xa   : > { %s1412_s20 = smov (%p27_p4, %s1410_s20), 0 }
   0xb   : > { %s29_s22 = ssub.s32 %s1003_s17, %s1412_s20  ;;  %141 = sbr.rel (%p768_p6) target bundleno = 38 (0x26), region = 24 }
   0xc   : > { %s31_s23 = sor.u32 %s30_s21, %s29_s22 }
   0xd   : > { %p32_p5 = scmp.eq.s32.totalorder %s31_s23, 0 }
   0xf   : > { %s1081_s25 = scalar_select %p32_p5, %s987_s13, %s34_s24  }
  0x10   : > { %144 = sbr.rel (!%p43_p3) target bundleno = 38 (0x26), region = 28  ;;  %s146_s26 = sand.u32 (%p43_p3), 1, %s987_s13  }
  0x11   : > { %s782_s27 = sshll.u32 (%p43_p3), %s1003_s17, 5  ;;  %s769_s28 = sshll.u32 (%p43_p3), %s146_s26, 7 }
  0x12   : > { %s151_s29 = sadd.s32 (%p43_p3), %s999_s16, %s782_s27  ;;  %s148_s7 = scalar_lea.vmem (%p43_p3), [#allocation2], %s769_s28 }
  0x13   : > { %s772_s30 = sshll.u32 (%p43_p3), %s151_s29, 3 }
  0x14   : > { %s1090_s6 = scalar_lea.vmem (%p43_p3), %s1397_s0, %s772_s30 }
  0x15   : > { %v212_v0 = vld [vmem:[%s1090_s6] sm:$0xff]  ;;  %v214_v1 = vld [vmem:[%s1090_s6 + $0x10] sm:$0xff] }
  0x16   : > { %v216_v2 = vld [vmem:[%s1090_s6 + $0x20] sm:$0xff]  ;;  %213 = vst [vmem:[%s148_s7] sm:$0xff] %v212_v0  ;;  %v218_v3 = vld [vmem:[%s1090_s6 + $0x30] sm:$0xff] }
  0x17   : > { %215 = vst [vmem:[%s148_s7 + $0x8] sm:$0xff] %v214_v1  ;;  %v220_v4 = vld [vmem:[%s1090_s6 + $0x40] sm:$0xff]  ;;  %v222_v5 = vld [vmem:[%s1090_s6 + $0x50] sm:$0xff] }
  0x18   : > { %217 = vst [vmem:[%s148_s7 + $0x10] sm:$0xff] %v216_v2  ;;  %v224_v6 = vld [vmem:[%s1090_s6 + $0x60] sm:$0xff]  ;;  %v226_v7 = vld [vmem:[%s1090_s6 + $0x70] sm:$0xff] }
  0x19   : > { %219 = vst [vmem:[%s148_s7 + $0x18] sm:$0xff] %v218_v3  ;;  %v228_v8 = vld [vmem:[%s1090_s6 + $0x80] sm:$0xff]  ;;  %v230_v9 = vld [vmem:[%s1090_s6 + $0x90] sm:$0xff] }
  0x1a   : > { %221 = vst [vmem:[%s148_s7 + $0x20] sm:$0xff] %v220_v4  ;;  %v232_v10 = vld [vmem:[%s1090_s6 + $0xa0] sm:$0xff]  ;;  %v234_v11 = vld [vmem:[%s1090_s6 + $0xb0] sm:$0xff] }
  0x1b   : > { %223 = vst [vmem:[%s148_s7 + $0x28] sm:$0xff] %v222_v5  ;;  %v236_v12 = vld [vmem:[%s1090_s6 + $0xc0] sm:$0xff]  ;;  %v238_v13 = vld [vmem:[%s1090_s6 + $0xd0] sm:$0xff] }
  0x1c   : > { %225 = vst [vmem:[%s148_s7 + $0x30] sm:$0xff] %v224_v6  ;;  %v240_v14 = vld [vmem:[%s1090_s6 + $0xe0] sm:$0xff]  ;;  %v242_v15 = vld [vmem:[%s1090_s6 + $0xf0] sm:$0xff] }
  0x1d   : > { %227 = vst [vmem:[%s148_s7 + $0x38] sm:$0xff] %v226_v7 }
  0x1e   : > { %229 = vst [vmem:[%s148_s7 + $0x40] sm:$0xff] %v228_v8 }
  0x1f   : > { %231 = vst [vmem:[%s148_s7 + $0x48] sm:$0xff] %v230_v9 }
  0x20   : > { %233 = vst [vmem:[%s148_s7 + $0x50] sm:$0xff] %v232_v10 }
  0x21   : > { %235 = vst [vmem:[%s148_s7 + $0x58] sm:$0xff] %v234_v11 }
  0x22   : > { %237 = vst [vmem:[%s148_s7 + $0x60] sm:$0xff] %v236_v12 }
  0x23   : > { %239 = vst [vmem:[%s148_s7 + $0x68] sm:$0xff] %v238_v13 }
  0x24   : > { %241 = vst [vmem:[%s148_s7 + $0x70] sm:$0xff] %v240_v14 }
  0x25   : > { %243 = vst [vmem:[%s148_s7 + $0x78] sm:$0xff] %v242_v15 }
  0x26 PF: > { %p773_p7 = scmp.ge.s32.totalorder %s1007_s18, 1  ;;  %p248_p8 = scmp.lt.s32.totalorder %s1007_s18, 5 }
  0x28   : > { %p249_p9 = pnand %p773_p7, %p248_p8 }
  0x29   : > { %s255_s8 = sand.u32 (!%p249_p9), 1, %s983_s12   ;;  %s775_s9 = sshll.u32 (!%p249_p9), %s995_s15, 4 }
  0x2a   : > { %252 = sbr.rel (%p249_p9) target bundleno = 567 (0x237), region = 66  ;;  %s774_s10 = sshll.u32 (!%p249_p9), %s255_s8, 7 }
  0x2b   : > { %p280_p10 = scmp.lt.s32.totalorder (!%p249_p9), %s775_s9, 31  ;;  %s1117_s24 = scalar_lea.vmem (!%p249_p9), [#allocation2], %s774_s10 }
  0x2c   : > { %p777_p11 = scmp.ne.s32.totalorder (!%p249_p9), %s991_s14, 0 }
  0x2f   : > { %s1414_s9 = smov (!%p280_p10, %s775_s9), 31  ;;  %288 = sbr.rel (%p777_p11) target bundleno = 69 (0x45), region = 74 }
  0x30   : > { %s776_s11 = sshll.u32 %s1414_s9, 3 }
  0x31   : > { %s1115_s23 = scalar_lea.vmem %s1400_s3, %s776_s11 }
  0x34   : > { %v1009_v16 = vmov 0.0  }
  0x35   : > { %289 = vst [vmem:[%s1115_s23] sm:$0xff] %v1009_v16 }
  0x36   : > { %290 = vst [vmem:[%s1115_s23 + $0x8] sm:$0xff] %v1009_v16 }
  0x37   : > { %291 = vst [vmem:[%s1115_s23 + $0x10] sm:$0xff] %v1009_v16 }
  0x38   : > { %292 = vst [vmem:[%s1115_s23 + $0x18] sm:$0xff] %v1009_v16 }
  0x39   : > { %293 = vst [vmem:[%s1115_s23 + $0x20] sm:$0xff] %v1009_v16 }
  0x3a   : > { %294 = vst [vmem:[%s1115_s23 + $0x28] sm:$0xff] %v1009_v16 }
  0x3b   : > { %295 = vst [vmem:[%s1115_s23 + $0x30] sm:$0xff] %v1009_v16 }
  0x3c   : > { %296 = vst [vmem:[%s1115_s23 + $0x38] sm:$0xff] %v1009_v16 }
  0x3d   : > { %297 = vst [vmem:[%s1115_s23 + $0x40] sm:$0xff] %v1009_v16 }
  0x3e   : > { %298 = vst [vmem:[%s1115_s23 + $0x48] sm:$0xff] %v1009_v16 }
  0x3f   : > { %299 = vst [vmem:[%s1115_s23 + $0x50] sm:$0xff] %v1009_v16 }
  0x40   : > { %300 = vst [vmem:[%s1115_s23 + $0x58] sm:$0xff] %v1009_v16 }
  0x41   : > { %301 = vst [vmem:[%s1115_s23 + $0x60] sm:$0xff] %v1009_v16 }
  0x42   : > { %302 = vst [vmem:[%s1115_s23 + $0x68] sm:$0xff] %v1009_v16 }
  0x43   : > { %303 = vst [vmem:[%s1115_s23 + $0x70] sm:$0xff] %v1009_v16 }
  0x44   : > { %304 = vst [vmem:[%s1115_s23 + $0x78] sm:$0xff] %v1009_v16 }
  0x45 PF: > { %s778_s12 = sshll.u32 %s991_s14, 7  ;;  %v347_v33 = vld [vmem:[%s1117_s24 + $0x40] sm:$0xff]  ;;  %v348_v37 = vld [vmem:[%s1117_s24 + $0x48] sm:$0xff]  ;;  %v349_v41 = vld [vmem:[%s1117_s24 + $0x50] sm:$0xff]  ;;  %p779_p12 = scmp.ne.s32.totalorder %s991_s14, 1 }
  0x46   : > { %s1140_s27 = scalar_lea.vmem %s1398_s1, %s778_s12  ;;  %v351_v34 = vld [vmem:[%s1117_s24 + $0x60] sm:$0xff]  ;;  %v352_v38 = vld [vmem:[%s1117_s24 + $0x68] sm:$0xff]  ;;  %v353_v42 = vld [vmem:[%s1117_s24 + $0x70] sm:$0xff] }
  0x47   : > { %v322_v17 = vld [vmem:[%s1140_s27 + $0x78] sm:$0xff]  ;;  %v321_v18 = vld [vmem:[%s1140_s27 + $0x70] sm:$0xff]  ;;  %v320_v19 = vld [vmem:[%s1140_s27 + $0x68] sm:$0xff] }
  0x48   : > { %784 = vmatpush.msra.mxu2 %v322_v17  ;;  %785 = vmatpush.msra.mxu3 %v322_v17  ;;  %v319_v20 = vld [vmem:[%s1140_s27 + $0x60] sm:$0xff]  ;;  %v318_v21 = vld [vmem:[%s1140_s27 + $0x58] sm:$0xff]  ;;  %v317_v22 = vld [vmem:[%s1140_s27 + $0x50] sm:$0xff] }
  0x49   : > { %355 = vmatpush.msra.mxu0 %v322_v17  ;;  %783 = vmatpush.msra.mxu1 %v322_v17  ;;  %v316_v23 = vld [vmem:[%s1140_s27 + $0x48] sm:$0xff]  ;;  %v315_v24 = vld [vmem:[%s1140_s27 + $0x40] sm:$0xff]  ;;  %v314_v25 = vld [vmem:[%s1140_s27 + $0x38] sm:$0xff] }
  0x4a   : > { %787 = vmatpush.msra.mxu2 %v321_v18  ;;  %788 = vmatpush.msra.mxu3 %v321_v18  ;;  %v313_v26 = vld [vmem:[%s1140_s27 + $0x30] sm:$0xff]  ;;  %v312_v27 = vld [vmem:[%s1140_s27 + $0x28] sm:$0xff]  ;;  %v311_v28 = vld [vmem:[%s1140_s27 + $0x20] sm:$0xff] }
  0x4b   : > { %356 = vmatpush.msra.mxu0 %v321_v18  ;;  %786 = vmatpush.msra.mxu1 %v321_v18  ;;  %v310_v29 = vld [vmem:[%s1140_s27 + $0x18] sm:$0xff]  ;;  %v309_v30 = vld [vmem:[%s1140_s27 + $0x10] sm:$0xff]  ;;  %v308_v31 = vld [vmem:[%s1140_s27 + $0x8] sm:$0xff] }
  0x4c   : > { %790 = vmatpush.msra.mxu2 %v320_v19  ;;  %791 = vmatpush.msra.mxu3 %v320_v19  ;;  %v307_v32 = vld [vmem:[%s1140_s27] sm:$0xff]  ;;  %v340_v39 = vld [vmem:[%s1117_s24 + $0x8] sm:$0xff]  ;;  %v341_v43 = vld [vmem:[%s1117_s24 + $0x10] sm:$0xff] }
  0x4d   : > { %357 = vmatpush.msra.mxu0 %v320_v19  ;;  %789 = vmatpush.msra.mxu1 %v320_v19  ;;  %v339_v35 = vld [vmem:[%s1117_s24] sm:$0xff]  ;;  %v344_v40 = vld [vmem:[%s1117_s24 + $0x28] sm:$0xff]  ;;  %v345_v44 = vld [vmem:[%s1117_s24 + $0x30] sm:$0xff] }
  0x4e   : > { %793 = vmatpush.msra.mxu2 %v319_v20  ;;  %794 = vmatpush.msra.mxu3 %v319_v20  ;;  %v343_v36 = vld [vmem:[%s1117_s24 + $0x20] sm:$0xff]  ;;  %v350_v45 = vld [vmem:[%s1117_s24 + $0x58] sm:$0xff]  ;;  %v324_v61 = vld [vmem:[%s1115_s23 + $0x8] sm:$0xff] }
  0x4f   : > { %358 = vmatpush.msra.mxu0 %v319_v20  ;;  %792 = vmatpush.msra.mxu1 %v319_v20  ;;  %v354_v46 = vld [vmem:[%s1117_s24 + $0x78] sm:$0xff]  ;;  %v323_v49 = vld [vmem:[%s1115_s23] sm:$0xff]  ;;  %v328_v62 = vld [vmem:[%s1115_s23 + $0x28] sm:$0xff] }
  0x50   : > { %796 = vmatpush.msra.mxu2 %v318_v21  ;;  %797 = vmatpush.msra.mxu3 %v318_v21  ;;  %v342_v47 = vld [vmem:[%s1117_s24 + $0x18] sm:$0xff]  ;;  %v327_v50 = vld [vmem:[%s1115_s23 + $0x20] sm:$0xff]  ;;  %v332_v3 = vld [vmem:[%s1115_s23 + $0x48] sm:$0xff] }
  0x51   : > { %359 = vmatpush.msra.mxu0 %v318_v21  ;;  %795 = vmatpush.msra.mxu1 %v318_v21  ;;  %v346_v48 = vld [vmem:[%s1117_s24 + $0x38] sm:$0xff]  ;;  %v331_v55 = vld [vmem:[%s1115_s23 + $0x40] sm:$0xff]  ;;  %v336_v4 = vld [vmem:[%s1115_s23 + $0x68] sm:$0xff] }
  0x52   : > { %799 = vmatpush.msra.mxu2 %v317_v22  ;;  %800 = vmatpush.msra.mxu3 %v317_v22  ;;  %v335_v56 = vld [vmem:[%s1115_s23 + $0x60] sm:$0xff]  ;;  %v325_v9 = vld [vmem:[%s1115_s23 + $0x10] sm:$0xff]  ;;  %v326_v21 = vld [vmem:[%s1115_s23 + $0x18] sm:$0xff] }
  0x53   : > { %360 = vmatpush.msra.mxu0 %v317_v22  ;;  %798 = vmatpush.msra.mxu1 %v317_v22  ;;  %v329_v10 = vld [vmem:[%s1115_s23 + $0x30] sm:$0xff]  ;;  %v330_v22 = vld [vmem:[%s1115_s23 + $0x38] sm:$0xff] }
  0x54   : > { %802 = vmatpush.msra.mxu2 %v316_v23  ;;  %803 = vmatpush.msra.mxu3 %v316_v23  ;;  %v333_v15 = vld [vmem:[%s1115_s23 + $0x50] sm:$0xff] }
  0x55   : > { %361 = vmatpush.msra.mxu0 %v316_v23  ;;  %801 = vmatpush.msra.mxu1 %v316_v23  ;;  %v337_v16 = vld [vmem:[%s1115_s23 + $0x70] sm:$0xff] }
  0x56   : > { %805 = vmatpush.msra.mxu2 %v315_v24  ;;  %806 = vmatpush.msra.mxu3 %v315_v24 }
  0x57   : > { %362 = vmatpush.msra.mxu0 %v315_v24  ;;  %804 = vmatpush.msra.mxu1 %v315_v24 }
  0x58   : > { %808 = vmatpush.msra.mxu2 %v314_v25  ;;  %809 = vmatpush.msra.mxu3 %v314_v25 }
  0x59   : > { %363 = vmatpush.msra.mxu0 %v314_v25  ;;  %807 = vmatpush.msra.mxu1 %v314_v25 }
  0x5a   : > { %811 = vmatpush.msra.mxu2 %v313_v26  ;;  %812 = vmatpush.msra.mxu3 %v313_v26 }
  0x5b   : > { %364 = vmatpush.msra.mxu0 %v313_v26  ;;  %810 = vmatpush.msra.mxu1 %v313_v26 }
  0x5c   : > { %814 = vmatpush.msra.mxu2 %v312_v27  ;;  %815 = vmatpush.msra.mxu3 %v312_v27 }
  0x5d   : > { %365 = vmatpush.msra.mxu0 %v312_v27  ;;  %813 = vmatpush.msra.mxu1 %v312_v27  ;;  %v334_v27 = vld [vmem:[%s1115_s23 + $0x58] sm:$0xff] }
  0x5e   : > { %817 = vmatpush.msra.mxu2 %v311_v28  ;;  %818 = vmatpush.msra.mxu3 %v311_v28 }
  0x5f   : > { %366 = vmatpush.msra.mxu0 %v311_v28  ;;  %816 = vmatpush.msra.mxu1 %v311_v28  ;;  %v338_v28 = vld [vmem:[%s1115_s23 + $0x78] sm:$0xff] }
  0x60   : > { %820 = vmatpush.msra.mxu2 %v310_v29  ;;  %821 = vmatpush.msra.mxu3 %v310_v29 }
  0x61   : > { %367 = vmatpush.msra.mxu0 %v310_v29  ;;  %819 = vmatpush.msra.mxu1 %v310_v29 }
  0x62   : > { %823 = vmatpush.msra.mxu2 %v309_v30  ;;  %824 = vmatpush.msra.mxu3 %v309_v30 }
  0x63   : > { %368 = vmatpush.msra.mxu0 %v309_v30  ;;  %822 = vmatpush.msra.mxu1 %v309_v30 }
  0x64   : > { %826 = vmatpush.msra.mxu2 %v308_v31  ;;  %827 = vmatpush.msra.mxu3 %v308_v31 }
  0x65   : > { %369 = vmatpush.msra.mxu0 %v308_v31  ;;  %825 = vmatpush.msra.mxu1 %v308_v31 }
  0x66   : > { %829 = vmatpush.msra.mxu2 %v307_v32  ;;  %830 = vmatpush.msra.mxu3 %v307_v32 }
  0x67   : > { %395 = vmatmul.f32.vlgmr.msra.gmra.mxu2 %v347_v33  ;;  %407 = vmatmul.f32.vlgmr.msra.gmra.mxu3 %v351_v34 }
  0x68   : > { %370 = vmatpush.msra.mxu0 %v307_v32  ;;  %828 = vmatpush.msra.mxu1 %v307_v32 }
  0x69   : > { %371 = vmatmul.f32.vlgmr.msra.gmra.mxu0 %v339_v35  ;;  %383 = vmatmul.f32.vlgmr.msra.gmra.mxu1 %v343_v36 }
  0x6f   : > { %398 = vmatmul.f32.gmra.mxu2 %v348_v37  ;;  %410 = vmatmul.f32.gmra.mxu3 %v352_v38 }
  0x71   : > { %374 = vmatmul.f32.gmra.mxu0 %v340_v39  ;;  %386 = vmatmul.f32.gmra.mxu1 %v344_v40 }
  0x77   : > { %401 = vmatmul.f32.gmra.mxu2 %v349_v41  ;;  %413 = vmatmul.f32.gmra.mxu3 %v353_v42 }
  0x79   : > { %377 = vmatmul.f32.gmra.mxu0 %v341_v43  ;;  %389 = vmatmul.f32.gmra.mxu1 %v345_v44 }
  0x7f   : > { %404 = vmatmul.f32.gmra.mxu2 %v350_v45  ;;  %416 = vmatmul.f32.gmra.mxu3 %v354_v46 }
  0x81   : > { %380 = vmatmul.f32.gmra.mxu0 %v342_v47  ;;  %392 = vmatmul.f32.gmra.mxu1 %v346_v48 }
  0xe6   : > { %v372_v51 = vpop.f32.mrf.mxu0  ;;  %v384_v52 = vpop.f32.mrf.mxu1 }
  0xe7   : > { %v420_v53 = vadd.f32 %v372_v51, %v323_v49  ;;  %v424_v54 = vadd.f32 %v384_v52, %v327_v50 }
  0xe9   : > { %436 = vst [vmem:[%s1115_s23] sm:$0xff] %v420_v53 }
  0xea   : > { %440 = vst [vmem:[%s1115_s23 + $0x20] sm:$0xff] %v424_v54  ;;  %v396_v57 = vpop.f32.mrf.mxu2  ;;  %v408_v58 = vpop.f32.mrf.mxu3 }
  0xeb   : > { %v428_v59 = vadd.f32 %v396_v57, %v331_v55  ;;  %v432_v60 = vadd.f32 %v408_v58, %v335_v56 }
  0xed   : > { %444 = vst [vmem:[%s1115_s23 + $0x40] sm:$0xff] %v428_v59 }
  0xee   : > { %448 = vst [vmem:[%s1115_s23 + $0x60] sm:$0xff] %v432_v60  ;;  %v375_v63 = vpop.f32.mrf.mxu0  ;;  %v387_v0 = vpop.f32.mrf.mxu1 }
  0xef   : > { %v421_v1 = vadd.f32 %v375_v63, %v324_v61  ;;  %v425_v2 = vadd.f32 %v387_v0, %v328_v62 }
  0xf1   : > { %437 = vst [vmem:[%s1115_s23 + $0x8] sm:$0xff] %v421_v1 }
  0xf2   : > { %441 = vst [vmem:[%s1115_s23 + $0x28] sm:$0xff] %v425_v2  ;;  %v399_v5 = vpop.f32.mrf.mxu2  ;;  %v411_v6 = vpop.f32.mrf.mxu3 }
  0xf3   : > { %v429_v7 = vadd.f32 %v399_v5, %v332_v3  ;;  %v433_v8 = vadd.f32 %v411_v6, %v336_v4 }
  0xf5   : > { %445 = vst [vmem:[%s1115_s23 + $0x48] sm:$0xff] %v429_v7 }
  0xf6   : > { %449 = vst [vmem:[%s1115_s23 + $0x68] sm:$0xff] %v433_v8  ;;  %v378_v11 = vpop.f32.mrf.mxu0  ;;  %v390_v12 = vpop.f32.mrf.mxu1 }
  0xf7   : > { %v422_v13 = vadd.f32 %v378_v11, %v325_v9  ;;  %v426_v14 = vadd.f32 %v390_v12, %v329_v10 }
  0xf9   : > { %438 = vst [vmem:[%s1115_s23 + $0x10] sm:$0xff] %v422_v13 }
  0xfa   : > { %442 = vst [vmem:[%s1115_s23 + $0x30] sm:$0xff] %v426_v14  ;;  %v402_v17 = vpop.f32.mrf.mxu2  ;;  %v414_v18 = vpop.f32.mrf.mxu3 }
  0xfb   : > { %v430_v19 = vadd.f32 %v402_v17, %v333_v15  ;;  %v434_v20 = vadd.f32 %v414_v18, %v337_v16 }
  0xfd   : > { %446 = vst [vmem:[%s1115_s23 + $0x50] sm:$0xff] %v430_v19 }
  0xfe   : > { %450 = vst [vmem:[%s1115_s23 + $0x70] sm:$0xff] %v434_v20  ;;  %v381_v23 = vpop.f32.mrf.mxu0  ;;  %v393_v24 = vpop.f32.mrf.mxu1 }
  0xff   : > { %v423_v25 = vadd.f32 %v381_v23, %v326_v21  ;;  %v427_v26 = vadd.f32 %v393_v24, %v330_v22 }
 0x101   : > { %439 = vst [vmem:[%s1115_s23 + $0x18] sm:$0xff] %v423_v25 }
 0x102   : > { %443 = vst [vmem:[%s1115_s23 + $0x38] sm:$0xff] %v427_v26  ;;  %v405_v29 = vpop.f32.mrf.mxu2  ;;  %v417_v30 = vpop.f32.mrf.mxu3  ;;  %455 = sbr.rel (%p779_p12) target bundleno = 567 (0x237), region = 78 }
 0x103   : > { %v431_v31 = vadd.f32 %v405_v29, %v334_v27  ;;  %v435_v32 = vadd.f32 %v417_v30, %v338_v28 }
 0x105   : > { %447 = vst [vmem:[%s1115_s23 + $0x58] sm:$0xff] %v431_v31 }
 0x106   : > { %451 = vst [vmem:[%s1115_s23 + $0x78] sm:$0xff] %v435_v32 }
 0x107   : > { %v460_v33 = vld [vmem:[%s1115_s23 + $0x20] sm:$0xff]  ;;  %v492_v35 = vlaneseq  ;;  %v458_v36 = vld [vmem:[%s1115_s23 + $0x10] sm:$0xff]  ;;  %v461_v42 = vld [vmem:[%s1115_s23 + $0x28] sm:$0xff] }
 0x108   : > { %v1211_v34 = vld [vmem:[%s1399_s2] ss:$0 sm:$0xff]  ;;  %v459_v43 = vld [vmem:[%s1115_s23 + $0x18] sm:$0xff]  ;;  %v457_v44 = vld [vmem:[%s1115_s23 + $0x8] sm:$0xff] }
 0x109   : > { %v456_v37 = vld [vmem:[%s1115_s23] sm:$0xff]  ;;  %v480_v38 = vadd.f32 %v1211_v34, %v460_v33  ;;  %v493_v39 = vand.u32 127, %v492_v35  ;;  %v478_v40 = vadd.f32 %v1211_v34, %v458_v36  ;;  %v481_v48 = vadd.f32 %v1211_v34, %v461_v42  ;;  %v463_v55 = vld [vmem:[%s1115_s23 + $0x38] sm:$0xff]  ;;  %v462_v56 = vld [vmem:[%s1115_s23 + $0x30] sm:$0xff] }
 0x10a   : > { %v476_v41 = vadd.f32 %v1211_v34, %v456_v37  ;;  %v479_v49 = vadd.f32 %v1211_v34, %v459_v43  ;;  %v477_v50 = vadd.f32 %v1211_v34, %v457_v44  ;;  %v464_v54 = vld [vmem:[%s1115_s23 + $0x40] sm:$0xff]  ;;  %v483_v58 = vadd.f32 %v1211_v34, %v463_v55  ;;  %v466_v0 = vld [vmem:[%s1115_s23 + $0x50] sm:$0xff]  ;;  %v465_v1 = vld [vmem:[%s1115_s23 + $0x48] sm:$0xff] }
 0x10b   : > { %vm494_vm0 = vcmp.lt.s32.totalorder %v493_v39, 27  ;;  %v484_v57 = vadd.f32 %v1211_v34, %v464_v54  ;;  %v482_v59 = vadd.f32 %v1211_v34, %v462_v56  ;;  %v486_v3 = vadd.f32 %v1211_v34, %v466_v0  ;;  %v470_v8 = vld [vmem:[%s1115_s23 + $0x70] sm:$0xff]  ;;  %v469_v9 = vld [vmem:[%s1115_s23 + $0x68] sm:$0xff]  ;;  %v468_v10 = vld [vmem:[%s1115_s23 + $0x60] sm:$0xff] }
 0x10c   : > { %v1222_v45 = vsel %vm494_vm0, %v480_v38, -1e+30  ;;  %v497_v46 = vsel %vm494_vm0, %v478_v40, -1e+30  ;;  %v495_v47 = vsel %vm494_vm0, %v476_v41, -1e+30  ;;  %v485_v4 = vadd.f32 %v1211_v34, %v465_v1 }
 0x10d   : > { %519 = vmax.xlane.f32.xlu2 %v1222_v45  ;;  %515 = vmax.xlane.f32.xlu1 %v497_v46  ;;  %v500_v51 = vsel %vm494_vm0, %v481_v48, -1e+30  ;;  %v498_v52 = vsel %vm494_vm0, %v479_v49, -1e+30  ;;  %v496_v53 = vsel %vm494_vm0, %v477_v50, -1e+30  ;;  %v490_v11 = vadd.f32 %v1211_v34, %v470_v8 }
 0x10e   : > { %511 = vmax.xlane.f32.xlu0 %v495_v47  ;;  %v503_v60 = vsel %vm494_vm0, %v484_v57, -1e+30  ;;  %v1241_v61 = vsel %vm494_vm0, %v483_v58, -1e+30  ;;  %v501_v62 = vsel %vm494_vm0, %v482_v59, -1e+30  ;;  %v489_v12 = vadd.f32 %v1211_v34, %v469_v9 }
 0x10f   : > { %v467_v63 = vld [vmem:[%s1115_s23 + $0x58] sm:$0xff]  ;;  %v1255_v6 = vsel %vm494_vm0, %v486_v3, -1e+30  ;;  %v1258_v7 = vsel %vm494_vm0, %v485_v4, -1e+30  ;;  %v488_v13 = vadd.f32 %v1211_v34, %v468_v10 }
 0x110   : > { %v487_v2 = vadd.f32 %v1211_v34, %v467_v63  ;;  %v1270_v14 = vsel %vm494_vm0, %v490_v11, -1e+30  ;;  %v1273_v15 = vsel %vm494_vm0, %v489_v12, -1e+30  ;;  %v471_v17 = vld [vmem:[%s1115_s23 + $0x78] sm:$0xff] }
 0x111   : > { %v1276_v16 = vsel %vm494_vm0, %v488_v13, -1e+30  ;;  %v491_v18 = vadd.f32 %v1211_v34, %v471_v17 }
 0x112   : > { %v1252_v5 = vsel %vm494_vm0, %v487_v2, -1e+30 }
 0x113   : > { %v1284_v19 = vsel %vm494_vm0, %v491_v18, -1e+30 }
 0x115   : > { %521 = vmax.xlane.f32.xlu2 %v500_v51  ;;  %517 = vmax.xlane.f32.xlu1 %v498_v52 }
 0x116   : > { %513 = vmax.xlane.f32.xlu0 %v496_v53 }
 0x11d   : > { %527 = vmax.xlane.f32.xlu2 %v503_v60  ;;  %525 = vmax.xlane.f32.xlu1 %v1241_v61 }
 0x11e   : > { %523 = vmax.xlane.f32.xlu0 %v501_v62 }
 0x125   : > { %533 = vmax.xlane.f32.xlu2 %v1252_v5  ;;  %531 = vmax.xlane.f32.xlu1 %v1255_v6 }
 0x126   : > { %529 = vmax.xlane.f32.xlu0 %v1258_v7 }
 0x12d   : > { %539 = vmax.xlane.f32.xlu2 %v1270_v14  ;;  %537 = vmax.xlane.f32.xlu1 %v1273_v15 }
 0x12e   : > { %535 = vmax.xlane.f32.xlu0 %v1276_v16 }
 0x136   : > { %541 = vmax.xlane.f32.xlu0 %v1284_v19 }
 0x180   : > { %v520_v20 = vpop.xlane.xlu2 %519  ;;  %v516_v21 = vpop.xlane.xlu1 %515 }
 0x181   : > { %v1287_v22 = vsub.f32 %v497_v46, %v516_v21  ;;  %v512_v23 = vpop.xlane.xlu0 %511  ;;  %v1303_v38 = vsub.f32 %v1222_v45, %v520_v20 }
 0x182   : > { %v1289_v24 = vsub.f32 %v495_v47, %v512_v23 }
 0x183   : > { %v563_v25 = vmul.f32 1.442695, %v1287_v22  ;;  %v567_v46 = vmul.f32 1.442695, %v1303_v38 }
 0x184   : > { %v559_v26 = vmul.f32 1.442695, %v1289_v24 }
 0x185   : > { %889 = vpow2.f32 %v563_v25 }
 0x186   : > { %891 = vpow2.f32 %v559_v26 }
 0x188   : > { %v522_v27 = vpop.xlane.xlu2 %521  ;;  %v518_v28 = vpop.xlane.xlu1 %517 }
 0x189   : > { %v1293_v29 = vsub.f32 %v500_v51, %v522_v27  ;;  %v1295_v30 = vsub.f32 %v498_v52, %v518_v28  ;;  %v514_v31 = vpop.xlane.xlu0 %513 }
 0x18a   : > { %v1297_v32 = vsub.f32 %v496_v53, %v514_v31 }
 0x18b   : > { %v569_v33 = vmul.f32 1.442695, %v1293_v29  ;;  %v565_v34 = vmul.f32 1.442695, %v1295_v30  ;;  %v890_v35 = vpop.eup %889 }
 0x18c   : > { %v561_v36 = vmul.f32 1.442695, %v1297_v32  ;;  %v892_v37 = vpop.eup %891  ;;  %595 = vadd.xlane.f32.xlu0 %v890_v35 }
 0x18d   : > { %893 = vpow2.f32 %v569_v33  ;;  %591 = vadd.xlane.f32.xlu1 %v892_v37 }
 0x18e   : > { %895 = vpow2.f32 %v565_v34 }
 0x18f   : > { %897 = vpow2.f32 %v561_v36 }
 0x190   : > { %v528_v39 = vpop.xlane.xlu2 %527  ;;  %v526_v40 = vpop.xlane.xlu1 %525 }
 0x191   : > { %v1305_v41 = vsub.f32 %v503_v60, %v528_v39  ;;  %v524_v42 = vpop.xlane.xlu0 %523  ;;  %v1313_v50 = vsub.f32 %v1241_v61, %v526_v40 }
 0x192   : > { %v1307_v43 = vsub.f32 %v501_v62, %v524_v42 }
 0x193   : > { %v894_v44 = vpop.eup %893  ;;  %v575_v47 = vmul.f32 1.442695, %v1305_v41  ;;  %v573_v52 = vmul.f32 1.442695, %v1313_v50 }
 0x194   : > { %v896_v48 = vpop.eup %895  ;;  %v571_v49 = vmul.f32 1.442695, %v1307_v43  ;;  %601 = vadd.xlane.f32.xlu0 %v894_v44 }
 0x195   : > { %v898_v45 = vpop.eup %897  ;;  %899 = vpow2.f32 %v575_v47  ;;  %597 = vadd.xlane.f32.xlu1 %v896_v48 }
 0x196   : > { %901 = vpow2.f32 %v571_v49  ;;  %593 = vadd.xlane.f32.xlu2 %v898_v45 }
 0x197   : > { %903 = vpow2.f32 %v567_v46 }
 0x198   : > { %v534_v51 = vpop.xlane.xlu2 %533  ;;  %v532_v53 = vpop.xlane.xlu1 %531  ;;  %905 = vpow2.f32 %v573_v52 }
 0x199   : > { %v1317_v54 = vsub.f32 %v1252_v5, %v534_v51  ;;  %v530_v55 = vpop.xlane.xlu0 %529  ;;  %v1325_v61 = vsub.f32 %v1255_v6, %v532_v53 }
 0x19a   : > { %v1320_v56 = vsub.f32 %v1258_v7, %v530_v55 }
 0x19b   : > { %v900_v57 = vpop.eup %899  ;;  %v581_v58 = vmul.f32 1.442695, %v1317_v54  ;;  %v579_v0 = vmul.f32 1.442695, %v1325_v61 }
 0x19c   : > { %v902_v59 = vpop.eup %901  ;;  %v577_v60 = vmul.f32 1.442695, %v1320_v56  ;;  %607 = vadd.xlane.f32.xlu0 %v900_v57 }
 0x19d   : > { %v904_v62 = vpop.eup %903  ;;  %907 = vpow2.f32 %v581_v58  ;;  %603 = vadd.xlane.f32.xlu1 %v902_v59 }
 0x19e   : > { %909 = vpow2.f32 %v577_v60  ;;  %599 = vadd.xlane.f32.xlu2 %v904_v62  ;;  %v906_v3 = vpop.eup %905 }
 0x19f   : > { %911 = vpow2.f32 %v579_v0 }
 0x1a0   : > { %v540_v63 = vpop.xlane.xlu2 %539  ;;  %v538_v5 = vpop.xlane.xlu1 %537 }
 0x1a1   : > { %v1329_v1 = vsub.f32 %v1270_v14, %v540_v63  ;;  %v536_v2 = vpop.xlane.xlu0 %535  ;;  %v1337_v10 = vsub.f32 %v1273_v15, %v538_v5 }
 0x1a2   : > { %v1332_v4 = vsub.f32 %v1276_v16, %v536_v2 }
 0x1a3   : > { %v908_v6 = vpop.eup %907  ;;  %v587_v7 = vmul.f32 1.442695, %v1329_v1  ;;  %v585_v11 = vmul.f32 1.442695, %v1337_v10 }
 0x1a4   : > { %v910_v8 = vpop.eup %909  ;;  %v583_v9 = vmul.f32 1.442695, %v1332_v4  ;;  %613 = vadd.xlane.f32.xlu0 %v908_v6 }
 0x1a5   : > { %913 = vpow2.f32 %v587_v7  ;;  %609 = vadd.xlane.f32.xlu1 %v910_v8  ;;  %v912_v13 = vpop.eup %911 }
 0x1a6   : > { %915 = vpow2.f32 %v583_v9  ;;  %605 = vadd.xlane.f32.xlu2 %v906_v3 }
 0x1a7   : > { %917 = vpow2.f32 %v585_v11 }
 0x1a9   : > { %v542_v12 = vpop.xlane.xlu0 %541 }
 0x1aa   : > { %v1341_v14 = vsub.f32 %v1284_v19, %v542_v12 }
 0x1ab   : > { %v914_v16 = vpop.eup %913 }
 0x1ac   : > { %v916_v17 = vpop.eup %915  ;;  %v589_v18 = vmul.f32 1.442695, %v1341_v14  ;;  %619 = vadd.xlane.f32.xlu0 %v914_v16 }
 0x1ad   : > { %615 = vadd.xlane.f32.xlu1 %v916_v17  ;;  %v918_v15 = vpop.eup %917 }
 0x1ae   : > { %919 = vpow2.f32 %v589_v18  ;;  %611 = vadd.xlane.f32.xlu2 %v912_v13 }
 0x1b4   : > { %v920_v20 = vpop.eup %919 }
 0x1b5   : > { %621 = vadd.xlane.f32.xlu1 %v920_v20 }
 0x1b6   : > { %617 = vadd.xlane.f32.xlu2 %v918_v15 }
 0x1ff   : > { %v596_v21 = vpop.xlane.xlu0 %595 }
 0x200   : > { %v592_v23 = vpop.xlane.xlu1 %591  ;;  %921 = vlog2.f32 %v596_v21 }
 0x201   : > { %923 = vlog2.f32 %v592_v23 }
 0x206   : > { %v922_v19 = vpop.eup %921 }
 0x207   : > { %v924_v25 = vpop.eup %923  ;;  %v628_v26 = vmul.f32 0.6931472, %v922_v19  ;;  %v602_v27 = vpop.xlane.xlu0 %601 }
 0x208   : > { %v624_v28 = vmul.f32 0.6931472, %v924_v25  ;;  %v598_v31 = vpop.xlane.xlu1 %597  ;;  %925 = vlog2.f32 %v602_v27 }
 0x209   : > { %v594_v33 = vpop.xlane.xlu2 %593  ;;  %v657_v34 = vsub.f32 %v1287_v22, %v628_v26  ;;  %927 = vlog2.f32 %v598_v31 }
 0x20a   : > { %v655_v35 = vsub.f32 %v1289_v24, %v624_v28  ;;  %929 = vlog2.f32 %v594_v33 }
 0x20b   : > { %673 = vst [vmem:[%s1115_s23 + $0x10] sm:$0xff] %v657_v34 }
 0x20c   : > { %671 = vst [vmem:[%s1115_s23] sm:$0xff] %v655_v35 }
 0x20e   : > { %v926_v36 = vpop.eup %925 }
 0x20f   : > { %v928_v37 = vpop.eup %927  ;;  %v634_v39 = vmul.f32 0.6931472, %v926_v36  ;;  %v608_v40 = vpop.xlane.xlu0 %607 }
 0x210   : > { %v930_v42 = vpop.eup %929  ;;  %v630_v44 = vmul.f32 0.6931472, %v928_v37  ;;  %v604_v47 = vpop.xlane.xlu1 %603  ;;  %931 = vlog2.f32 %v608_v40 }
 0x211   : > { %v600_v46 = vpop.xlane.xlu2 %599  ;;  %v626_v48 = vmul.f32 0.6931472, %v930_v42  ;;  %v660_v22 = vsub.f32 %v1293_v29, %v634_v39 }
 0x212   : > { %933 = vlog2.f32 %v600_v46  ;;  %v658_v24 = vsub.f32 %v1295_v30, %v630_v44 }
 0x213   : > { %935 = vlog2.f32 %v604_v47  ;;  %v656_v49 = vsub.f32 %v1297_v32, %v626_v48  ;;  %676 = vst [vmem:[%s1115_s23 + $0x28] sm:$0xff] %v660_v22 }
 0x214   : > { %674 = vst [vmem:[%s1115_s23 + $0x18] sm:$0xff] %v658_v24 }
 0x215   : > { %672 = vst [vmem:[%s1115_s23 + $0x8] sm:$0xff] %v656_v49 }
 0x216   : > { %v932_v45 = vpop.eup %931 }
 0x217   : > { %v640_v52 = vmul.f32 0.6931472, %v932_v45  ;;  %v614_v53 = vpop.xlane.xlu0 %613 }
 0x218   : > { %v934_v51 = vpop.eup %933  ;;  %v610_v29 = vpop.xlane.xlu1 %609  ;;  %937 = vlog2.f32 %v614_v53 }
 0x219   : > { %v936_v55 = vpop.eup %935  ;;  %v632_v57 = vmul.f32 0.6931472, %v934_v51  ;;  %v606_v58 = vpop.xlane.xlu2 %605  ;;  %v663_v30 = vsub.f32 %v1305_v41, %v640_v52 }
 0x21a   : > { %v636_v59 = vmul.f32 0.6931472, %v936_v55  ;;  %939 = vlog2.f32 %v606_v58 }
 0x21b   : > { %v659_v32 = vsub.f32 %v1303_v38, %v632_v57  ;;  %941 = vlog2.f32 %v610_v29  ;;  %679 = vst [vmem:[%s1115_s23 + $0x40] sm:$0xff] %v663_v30 }
 0x21c   : > { %v661_v60 = vsub.f32 %v1307_v43, %v636_v59 }
 0x21d   : > { %675 = vst [vmem:[%s1115_s23 + $0x20] sm:$0xff] %v659_v32 }
 0x21e   : > { %677 = vst [vmem:[%s1115_s23 + $0x30] sm:$0xff] %v661_v60  ;;  %v938_v62 = vpop.eup %937 }
 0x21f   : > { %v646_v0 = vmul.f32 0.6931472, %v938_v62  ;;  %v620_v2 = vpop.xlane.xlu0 %619 }
 0x220   : > { %v940_v63 = vpop.eup %939  ;;  %v616_v41 = vpop.xlane.xlu1 %615  ;;  %943 = vlog2.f32 %v620_v2 }
 0x221   : > { %v942_v3 = vpop.eup %941  ;;  %v638_v5 = vmul.f32 0.6931472, %v940_v63  ;;  %v612_v6 = vpop.xlane.xlu2 %611  ;;  %v666_v38 = vsub.f32 %v1317_v54, %v646_v0 }
 0x222   : > { %v642_v7 = vmul.f32 0.6931472, %v942_v3  ;;  %945 = vlog2.f32 %v612_v6 }
 0x223   : > { %v662_v43 = vsub.f32 %v1313_v50, %v638_v5  ;;  %947 = vlog2.f32 %v616_v41  ;;  %682 = vst [vmem:[%s1115_s23 + $0x58] sm:$0xff] %v666_v38 }
 0x224   : > { %v664_v8 = vsub.f32 %v1320_v56, %v642_v7 }
 0x225   : > { %678 = vst [vmem:[%s1115_s23 + $0x38] sm:$0xff] %v662_v43 }
 0x226   : > { %680 = vst [vmem:[%s1115_s23 + $0x48] sm:$0xff] %v664_v8  ;;  %v944_v9 = vpop.eup %943 }
 0x227   : > { %v652_v12 = vmul.f32 0.6931472, %v944_v9 }
 0x228   : > { %v946_v11 = vpop.eup %945  ;;  %v622_v18 = vpop.xlane.xlu1 %621 }
 0x229   : > { %v948_v13 = vpop.eup %947  ;;  %v644_v16 = vmul.f32 0.6931472, %v946_v11  ;;  %v618_v17 = vpop.xlane.xlu2 %617  ;;  %v669_v50 = vsub.f32 %v1329_v1, %v652_v12 }
 0x22a   : > { %v648_v54 = vmul.f32 0.6931472, %v948_v13  ;;  %949 = vlog2.f32 %v618_v17 }
 0x22b   : > { %v665_v56 = vsub.f32 %v1325_v61, %v644_v16  ;;  %951 = vlog2.f32 %v622_v18  ;;  %685 = vst [vmem:[%s1115_s23 + $0x70] sm:$0xff] %v669_v50 }
 0x22c   : > { %v667_v15 = vsub.f32 %v1332_v4, %v648_v54 }
 0x22d   : > { %681 = vst [vmem:[%s1115_s23 + $0x50] sm:$0xff] %v665_v56 }
 0x22e   : > { %683 = vst [vmem:[%s1115_s23 + $0x60] sm:$0xff] %v667_v15 }
 0x230   : > { %v950_v20 = vpop.eup %949 }
 0x231   : > { %v952_v21 = vpop.eup %951  ;;  %v650_v23 = vmul.f32 0.6931472, %v950_v20 }
 0x232   : > { %v654_v19 = vmul.f32 0.6931472, %v952_v21 }
 0x233   : > { %v668_v25 = vsub.f32 %v1337_v10, %v650_v23 }
 0x234   : > { %v670_v26 = vsub.f32 %v1341_v14, %v654_v19 }
 0x235   : > { %684 = vst [vmem:[%s1115_s23 + $0x68] sm:$0xff] %v668_v25 }
 0x236   : > { %686 = vst [vmem:[%s1115_s23 + $0x78] sm:$0xff] %v670_v26 }
 0x237 PF: > { %s13_s18 = sadd.s32 1, %s1007_s18   ;;  %s1401_s12 = smov %s987_s13 }
 0x238   : > { %p10_p13 = scmp.ge.s32.totalorder %s13_s18, 6   ;;  %s1402_s13 = smov %s1081_s25 }
 0x239   : > { %s1403_s14 = smov %s999_s16  ;;  %s1404_s15 = smov %s1003_s17 }
 0x23a   : > { %s1405_s16 = smov %s1408_s19  ;;  %s1406_s17 = smov %s1412_s20 }
 0x23b   :  { %12 = sbr.rel (!%p10_p13) target bundleno = 4 (0x4), region = 114 }

// kernel: spatial_gcn_forward.5
= control target key start
LH: loop header
LB: loop body
LE: loop exit
PB: predicated region body
PF: predicated region fallthrough
CT: control target
= control target key end

     0   :  { %s803_s12 = smov 0   ;;  %s805_s13 = smov 0   ;;  %s1036_s0 = inlined_call_operand.vmem [shape: f32[256,256], index: 0, kind: input, shape index: {}]   ;;  %s1037_s1 = inlined_call_operand.vmem [shape: f32[256,128], index: 1, kind: input, shape index: {}]   ;;  %s1038_s2 = inlined_call_operand.vmem [shape: f32[1,128], index: 2, kind: input, shape index: {}]   ;;  %s1039_s3 = inlined_call_operand.vmem [shape: f32[256,128], index: 3, kind: output, shape index: {}]  }
   0x1   :  { %s807_s14 = smov 0   ;;  %s809_s15 = smov 0  }
   0x2   :  { %s811_s16 = smov 0   ;;  %s813_s17 = smov 0  }
   0x3   :  { %s815_s18 = smov 0  }
   0x4 LB: > { %s22_s19 = sadd.s32 1, %s772_s16  ;;  %s25_s20 = sadd.s32 1, %s776_s17  ;;  %s780_s18 = sphi %s815_s18, %s13_s18   ;;  %s776_s17 = sphi %s813_s17, %s1045_s17   ;;  %s772_s16 = sphi %s811_s16, %s1044_s16   ;;  %s768_s15 = sphi %s809_s15, %s1043_s15   ;;  %s764_s14 = sphi %s807_s14, %s1042_s14   ;;  %s760_s13 = sphi %s805_s13, %s1041_s13   ;;  %s756_s12 = sphi %s803_s12, %s1040_s12  }
   0x5   : > { %p23_p0 = scmp.ge.s32.totalorder %s22_s19, 2  ;;  %p41_p1 = scmp.ne.s32.totalorder %s760_s13, %s756_s12 }
   0x6   : > { %p42_p2 = scmp.eq.s32.totalorder %s780_s18, 0  ;;  %s34_s24 = sadd.s32 1, %s760_s13 }
   0x7   : > { %s1047_s19 = smov (%p23_p0, %s22_s19), 0  ;;  %s1049_s20 = smov (!%p23_p0, %s25_s20), %s776_s17 }
   0x8   : > { %p43_p3 = por %p42_p2, %p41_p1  ;;  %p27_p4 = scmp.ge.s32.totalorder %s1049_s20, 2 }
   0x9   : > { %s30_s21 = ssub.s32 %s772_s16, %s1047_s19  ;;  %p605_p6 = scmp.ge.s32.totalorder %s780_s18, 4 }
   0xa   : > { %s1051_s20 = smov (%p27_p4, %s1049_s20), 0 }
   0xb   : > { %s29_s22 = ssub.s32 %s776_s17, %s1051_s20  ;;  %141 = sbr.rel (%p605_p6) target bundleno = 38 (0x26), region = 24 }
   0xc   : > { %s31_s23 = sor.u32 %s30_s21, %s29_s22 }
   0xd   : > { %p32_p5 = scmp.eq.s32.totalorder %s31_s23, 0 }
   0xf   : > { %s854_s25 = scalar_select %p32_p5, %s760_s13, %s34_s24  }
  0x10   : > { %144 = sbr.rel (!%p43_p3) target bundleno = 38 (0x26), region = 28  ;;  %s146_s26 = sand.u32 (%p43_p3), 1, %s760_s13  }
  0x11   : > { %s619_s27 = sshll.u32 (%p43_p3), %s776_s17, 5  ;;  %s606_s28 = sshll.u32 (%p43_p3), %s146_s26, 7 }
  0x12   : > { %s151_s29 = sadd.s32 (%p43_p3), %s772_s16, %s619_s27  ;;  %s148_s7 = scalar_lea.vmem (%p43_p3), [#allocation2], %s606_s28 }
  0x13   : > { %s609_s30 = sshll.u32 (%p43_p3), %s151_s29, 3 }
  0x14   : > { %s863_s6 = scalar_lea.vmem (%p43_p3), %s1036_s0, %s609_s30 }
  0x15   : > { %v212_v0 = vld [vmem:[%s863_s6] sm:$0xff]  ;;  %v214_v1 = vld [vmem:[%s863_s6 + $0x10] sm:$0xff] }
  0x16   : > { %v216_v2 = vld [vmem:[%s863_s6 + $0x20] sm:$0xff]  ;;  %213 = vst [vmem:[%s148_s7] sm:$0xff] %v212_v0  ;;  %v218_v3 = vld [vmem:[%s863_s6 + $0x30] sm:$0xff] }
  0x17   : > { %215 = vst [vmem:[%s148_s7 + $0x8] sm:$0xff] %v214_v1  ;;  %v220_v4 = vld [vmem:[%s863_s6 + $0x40] sm:$0xff]  ;;  %v222_v5 = vld [vmem:[%s863_s6 + $0x50] sm:$0xff] }
  0x18   : > { %217 = vst [vmem:[%s148_s7 + $0x10] sm:$0xff] %v216_v2  ;;  %v224_v6 = vld [vmem:[%s863_s6 + $0x60] sm:$0xff]  ;;  %v226_v7 = vld [vmem:[%s863_s6 + $0x70] sm:$0xff] }
  0x19   : > { %219 = vst [vmem:[%s148_s7 + $0x18] sm:$0xff] %v218_v3  ;;  %v228_v8 = vld [vmem:[%s863_s6 + $0x80] sm:$0xff]  ;;  %v230_v9 = vld [vmem:[%s863_s6 + $0x90] sm:$0xff] }
  0x1a   : > { %221 = vst [vmem:[%s148_s7 + $0x20] sm:$0xff] %v220_v4  ;;  %v232_v10 = vld [vmem:[%s863_s6 + $0xa0] sm:$0xff]  ;;  %v234_v11 = vld [vmem:[%s863_s6 + $0xb0] sm:$0xff] }
  0x1b   : > { %223 = vst [vmem:[%s148_s7 + $0x28] sm:$0xff] %v222_v5  ;;  %v236_v12 = vld [vmem:[%s863_s6 + $0xc0] sm:$0xff]  ;;  %v238_v13 = vld [vmem:[%s863_s6 + $0xd0] sm:$0xff] }
  0x1c   : > { %225 = vst [vmem:[%s148_s7 + $0x30] sm:$0xff] %v224_v6  ;;  %v240_v14 = vld [vmem:[%s863_s6 + $0xe0] sm:$0xff]  ;;  %v242_v15 = vld [vmem:[%s863_s6 + $0xf0] sm:$0xff] }
  0x1d   : > { %227 = vst [vmem:[%s148_s7 + $0x38] sm:$0xff] %v226_v7 }
  0x1e   : > { %229 = vst [vmem:[%s148_s7 + $0x40] sm:$0xff] %v228_v8 }
  0x1f   : > { %231 = vst [vmem:[%s148_s7 + $0x48] sm:$0xff] %v230_v9 }
  0x20   : > { %233 = vst [vmem:[%s148_s7 + $0x50] sm:$0xff] %v232_v10 }
  0x21   : > { %235 = vst [vmem:[%s148_s7 + $0x58] sm:$0xff] %v234_v11 }
  0x22   : > { %237 = vst [vmem:[%s148_s7 + $0x60] sm:$0xff] %v236_v12 }
  0x23   : > { %239 = vst [vmem:[%s148_s7 + $0x68] sm:$0xff] %v238_v13 }
  0x24   : > { %241 = vst [vmem:[%s148_s7 + $0x70] sm:$0xff] %v240_v14 }
  0x25   : > { %243 = vst [vmem:[%s148_s7 + $0x78] sm:$0xff] %v242_v15 }
  0x26 PF: > { %p610_p7 = scmp.ge.s32.totalorder %s780_s18, 1  ;;  %p248_p8 = scmp.lt.s32.totalorder %s780_s18, 5 }
  0x28   : > { %p249_p9 = pnand %p610_p7, %p248_p8 }
  0x29   : > { %s255_s8 = sand.u32 (!%p249_p9), 1, %s756_s12   ;;  %s612_s9 = sshll.u32 (!%p249_p9), %s768_s15, 4 }
  0x2a   : > { %252 = sbr.rel (%p249_p9) target bundleno = 285 (0x11d), region = 66  ;;  %s611_s10 = sshll.u32 (!%p249_p9), %s255_s8, 7 }
  0x2b   : > { %p280_p10 = scmp.lt.s32.totalorder (!%p249_p9), %s612_s9, 31  ;;  %s890_s24 = scalar_lea.vmem (!%p249_p9), [#allocation2], %s611_s10 }
  0x2c   : > { %p614_p11 = scmp.ne.s32.totalorder (!%p249_p9), %s764_s14, 0 }
  0x2f   : > { %s1053_s9 = smov (!%p280_p10, %s612_s9), 31  ;;  %288 = sbr.rel (%p614_p11) target bundleno = 69 (0x45), region = 74 }
  0x30   : > { %s613_s11 = sshll.u32 %s1053_s9, 3 }
  0x31   : > { %s888_s23 = scalar_lea.vmem %s1039_s3, %s613_s11 }
  0x34   : > { %v782_v16 = vmov 0.0  }
  0x35   : > { %289 = vst [vmem:[%s888_s23] sm:$0xff] %v782_v16 }
  0x36   : > { %290 = vst [vmem:[%s888_s23 + $0x8] sm:$0xff] %v782_v16 }
  0x37   : > { %291 = vst [vmem:[%s888_s23 + $0x10] sm:$0xff] %v782_v16 }
  0x38   : > { %292 = vst [vmem:[%s888_s23 + $0x18] sm:$0xff] %v782_v16 }
  0x39   : > { %293 = vst [vmem:[%s888_s23 + $0x20] sm:$0xff] %v782_v16 }
  0x3a   : > { %294 = vst [vmem:[%s888_s23 + $0x28] sm:$0xff] %v782_v16 }
  0x3b   : > { %295 = vst [vmem:[%s888_s23 + $0x30] sm:$0xff] %v782_v16 }
  0x3c   : > { %296 = vst [vmem:[%s888_s23 + $0x38] sm:$0xff] %v782_v16 }
  0x3d   : > { %297 = vst [vmem:[%s888_s23 + $0x40] sm:$0xff] %v782_v16 }
  0x3e   : > { %298 = vst [vmem:[%s888_s23 + $0x48] sm:$0xff] %v782_v16 }
  0x3f   : > { %299 = vst [vmem:[%s888_s23 + $0x50] sm:$0xff] %v782_v16 }
  0x40   : > { %300 = vst [vmem:[%s888_s23 + $0x58] sm:$0xff] %v782_v16 }
  0x41   : > { %301 = vst [vmem:[%s888_s23 + $0x60] sm:$0xff] %v782_v16 }
  0x42   : > { %302 = vst [vmem:[%s888_s23 + $0x68] sm:$0xff] %v782_v16 }
  0x43   : > { %303 = vst [vmem:[%s888_s23 + $0x70] sm:$0xff] %v782_v16 }
  0x44   : > { %304 = vst [vmem:[%s888_s23 + $0x78] sm:$0xff] %v782_v16 }
  0x45 PF: > { %s615_s12 = sshll.u32 %s764_s14, 7  ;;  %v347_v33 = vld [vmem:[%s890_s24 + $0x40] sm:$0xff]  ;;  %v348_v37 = vld [vmem:[%s890_s24 + $0x48] sm:$0xff]  ;;  %v349_v41 = vld [vmem:[%s890_s24 + $0x50] sm:$0xff]  ;;  %p616_p12 = scmp.ne.s32.totalorder %s764_s14, 1 }
  0x46   : > { %s913_s27 = scalar_lea.vmem %s1037_s1, %s615_s12  ;;  %v351_v34 = vld [vmem:[%s890_s24 + $0x60] sm:$0xff]  ;;  %v352_v38 = vld [vmem:[%s890_s24 + $0x68] sm:$0xff]  ;;  %v353_v42 = vld [vmem:[%s890_s24 + $0x70] sm:$0xff] }
  0x47   : > { %v322_v17 = vld [vmem:[%s913_s27 + $0x78] sm:$0xff]  ;;  %v321_v18 = vld [vmem:[%s913_s27 + $0x70] sm:$0xff]  ;;  %v320_v19 = vld [vmem:[%s913_s27 + $0x68] sm:$0xff] }
  0x48   : > { %621 = vmatpush.msra.mxu2 %v322_v17  ;;  %622 = vmatpush.msra.mxu3 %v322_v17  ;;  %v319_v20 = vld [vmem:[%s913_s27 + $0x60] sm:$0xff]  ;;  %v318_v21 = vld [vmem:[%s913_s27 + $0x58] sm:$0xff]  ;;  %v317_v22 = vld [vmem:[%s913_s27 + $0x50] sm:$0xff] }
  0x49   : > { %355 = vmatpush.msra.mxu0 %v322_v17  ;;  %620 = vmatpush.msra.mxu1 %v322_v17  ;;  %v316_v23 = vld [vmem:[%s913_s27 + $0x48] sm:$0xff]  ;;  %v315_v24 = vld [vmem:[%s913_s27 + $0x40] sm:$0xff]  ;;  %v314_v25 = vld [vmem:[%s913_s27 + $0x38] sm:$0xff] }
  0x4a   : > { %624 = vmatpush.msra.mxu2 %v321_v18  ;;  %625 = vmatpush.msra.mxu3 %v321_v18  ;;  %v313_v26 = vld [vmem:[%s913_s27 + $0x30] sm:$0xff]  ;;  %v312_v27 = vld [vmem:[%s913_s27 + $0x28] sm:$0xff]  ;;  %v311_v28 = vld [vmem:[%s913_s27 + $0x20] sm:$0xff] }
  0x4b   : > { %356 = vmatpush.msra.mxu0 %v321_v18  ;;  %623 = vmatpush.msra.mxu1 %v321_v18  ;;  %v310_v29 = vld [vmem:[%s913_s27 + $0x18] sm:$0xff]  ;;  %v309_v30 = vld [vmem:[%s913_s27 + $0x10] sm:$0xff]  ;;  %v308_v31 = vld [vmem:[%s913_s27 + $0x8] sm:$0xff] }
  0x4c   : > { %627 = vmatpush.msra.mxu2 %v320_v19  ;;  %628 = vmatpush.msra.mxu3 %v320_v19  ;;  %v307_v32 = vld [vmem:[%s913_s27] sm:$0xff]  ;;  %v340_v39 = vld [vmem:[%s890_s24 + $0x8] sm:$0xff]  ;;  %v341_v43 = vld [vmem:[%s890_s24 + $0x10] sm:$0xff] }
  0x4d   : > { %357 = vmatpush.msra.mxu0 %v320_v19  ;;  %626 = vmatpush.msra.mxu1 %v320_v19  ;;  %v339_v35 = vld [vmem:[%s890_s24] sm:$0xff]  ;;  %v344_v40 = vld [vmem:[%s890_s24 + $0x28] sm:$0xff]  ;;  %v345_v44 = vld [vmem:[%s890_s24 + $0x30] sm:$0xff] }
  0x4e   : > { %630 = vmatpush.msra.mxu2 %v319_v20  ;;  %631 = vmatpush.msra.mxu3 %v319_v20  ;;  %v343_v36 = vld [vmem:[%s890_s24 + $0x20] sm:$0xff]  ;;  %v350_v45 = vld [vmem:[%s890_s24 + $0x58] sm:$0xff]  ;;  %v324_v61 = vld [vmem:[%s888_s23 + $0x8] sm:$0xff] }
  0x4f   : > { %358 = vmatpush.msra.mxu0 %v319_v20  ;;  %629 = vmatpush.msra.mxu1 %v319_v20  ;;  %v354_v46 = vld [vmem:[%s890_s24 + $0x78] sm:$0xff]  ;;  %v323_v49 = vld [vmem:[%s888_s23] sm:$0xff]  ;;  %v328_v62 = vld [vmem:[%s888_s23 + $0x28] sm:$0xff] }
  0x50   : > { %633 = vmatpush.msra.mxu2 %v318_v21  ;;  %634 = vmatpush.msra.mxu3 %v318_v21  ;;  %v342_v47 = vld [vmem:[%s890_s24 + $0x18] sm:$0xff]  ;;  %v327_v50 = vld [vmem:[%s888_s23 + $0x20] sm:$0xff]  ;;  %v332_v3 = vld [vmem:[%s888_s23 + $0x48] sm:$0xff] }
  0x51   : > { %359 = vmatpush.msra.mxu0 %v318_v21  ;;  %632 = vmatpush.msra.mxu1 %v318_v21  ;;  %v346_v48 = vld [vmem:[%s890_s24 + $0x38] sm:$0xff]  ;;  %v331_v55 = vld [vmem:[%s888_s23 + $0x40] sm:$0xff]  ;;  %v336_v4 = vld [vmem:[%s888_s23 + $0x68] sm:$0xff] }
  0x52   : > { %636 = vmatpush.msra.mxu2 %v317_v22  ;;  %637 = vmatpush.msra.mxu3 %v317_v22  ;;  %v335_v56 = vld [vmem:[%s888_s23 + $0x60] sm:$0xff]  ;;  %v325_v9 = vld [vmem:[%s888_s23 + $0x10] sm:$0xff]  ;;  %v326_v21 = vld [vmem:[%s888_s23 + $0x18] sm:$0xff] }
  0x53   : > { %360 = vmatpush.msra.mxu0 %v317_v22  ;;  %635 = vmatpush.msra.mxu1 %v317_v22  ;;  %v329_v10 = vld [vmem:[%s888_s23 + $0x30] sm:$0xff]  ;;  %v330_v22 = vld [vmem:[%s888_s23 + $0x38] sm:$0xff] }
  0x54   : > { %639 = vmatpush.msra.mxu2 %v316_v23  ;;  %640 = vmatpush.msra.mxu3 %v316_v23  ;;  %v333_v15 = vld [vmem:[%s888_s23 + $0x50] sm:$0xff] }
  0x55   : > { %361 = vmatpush.msra.mxu0 %v316_v23  ;;  %638 = vmatpush.msra.mxu1 %v316_v23  ;;  %v337_v16 = vld [vmem:[%s888_s23 + $0x70] sm:$0xff] }
  0x56   : > { %642 = vmatpush.msra.mxu2 %v315_v24  ;;  %643 = vmatpush.msra.mxu3 %v315_v24 }
  0x57   : > { %362 = vmatpush.msra.mxu0 %v315_v24  ;;  %641 = vmatpush.msra.mxu1 %v315_v24 }
  0x58   : > { %645 = vmatpush.msra.mxu2 %v314_v25  ;;  %646 = vmatpush.msra.mxu3 %v314_v25 }
  0x59   : > { %363 = vmatpush.msra.mxu0 %v314_v25  ;;  %644 = vmatpush.msra.mxu1 %v314_v25 }
  0x5a   : > { %648 = vmatpush.msra.mxu2 %v313_v26  ;;  %649 = vmatpush.msra.mxu3 %v313_v26 }
  0x5b   : > { %364 = vmatpush.msra.mxu0 %v313_v26  ;;  %647 = vmatpush.msra.mxu1 %v313_v26 }
  0x5c   : > { %651 = vmatpush.msra.mxu2 %v312_v27  ;;  %652 = vmatpush.msra.mxu3 %v312_v27 }
  0x5d   : > { %365 = vmatpush.msra.mxu0 %v312_v27  ;;  %650 = vmatpush.msra.mxu1 %v312_v27  ;;  %v334_v27 = vld [vmem:[%s888_s23 + $0x58] sm:$0xff] }
  0x5e   : > { %654 = vmatpush.msra.mxu2 %v311_v28  ;;  %655 = vmatpush.msra.mxu3 %v311_v28 }
  0x5f   : > { %366 = vmatpush.msra.mxu0 %v311_v28  ;;  %653 = vmatpush.msra.mxu1 %v311_v28  ;;  %v338_v28 = vld [vmem:[%s888_s23 + $0x78] sm:$0xff] }
  0x60   : > { %657 = vmatpush.msra.mxu2 %v310_v29  ;;  %658 = vmatpush.msra.mxu3 %v310_v29 }
  0x61   : > { %367 = vmatpush.msra.mxu0 %v310_v29  ;;  %656 = vmatpush.msra.mxu1 %v310_v29 }
  0x62   : > { %660 = vmatpush.msra.mxu2 %v309_v30  ;;  %661 = vmatpush.msra.mxu3 %v309_v30 }
  0x63   : > { %368 = vmatpush.msra.mxu0 %v309_v30  ;;  %659 = vmatpush.msra.mxu1 %v309_v30 }
  0x64   : > { %663 = vmatpush.msra.mxu2 %v308_v31  ;;  %664 = vmatpush.msra.mxu3 %v308_v31 }
  0x65   : > { %369 = vmatpush.msra.mxu0 %v308_v31  ;;  %662 = vmatpush.msra.mxu1 %v308_v31 }
  0x66   : > { %666 = vmatpush.msra.mxu2 %v307_v32  ;;  %667 = vmatpush.msra.mxu3 %v307_v32 }
  0x67   : > { %395 = vmatmul.f32.vlgmr.msra.gmra.mxu2 %v347_v33  ;;  %407 = vmatmul.f32.vlgmr.msra.gmra.mxu3 %v351_v34 }
  0x68   : > { %370 = vmatpush.msra.mxu0 %v307_v32  ;;  %665 = vmatpush.msra.mxu1 %v307_v32 }
  0x69   : > { %371 = vmatmul.f32.vlgmr.msra.gmra.mxu0 %v339_v35  ;;  %383 = vmatmul.f32.vlgmr.msra.gmra.mxu1 %v343_v36 }
  0x6f   : > { %398 = vmatmul.f32.gmra.mxu2 %v348_v37  ;;  %410 = vmatmul.f32.gmra.mxu3 %v352_v38 }
  0x71   : > { %374 = vmatmul.f32.gmra.mxu0 %v340_v39  ;;  %386 = vmatmul.f32.gmra.mxu1 %v344_v40 }
  0x77   : > { %401 = vmatmul.f32.gmra.mxu2 %v349_v41  ;;  %413 = vmatmul.f32.gmra.mxu3 %v353_v42 }
  0x79   : > { %377 = vmatmul.f32.gmra.mxu0 %v341_v43  ;;  %389 = vmatmul.f32.gmra.mxu1 %v345_v44 }
  0x7f   : > { %404 = vmatmul.f32.gmra.mxu2 %v350_v45  ;;  %416 = vmatmul.f32.gmra.mxu3 %v354_v46 }
  0x81   : > { %380 = vmatmul.f32.gmra.mxu0 %v342_v47  ;;  %392 = vmatmul.f32.gmra.mxu1 %v346_v48 }
  0xe6   : > { %v372_v51 = vpop.f32.mrf.mxu0  ;;  %v384_v52 = vpop.f32.mrf.mxu1 }
  0xe7   : > { %v420_v53 = vadd.f32 %v372_v51, %v323_v49  ;;  %v424_v54 = vadd.f32 %v384_v52, %v327_v50 }
  0xe9   : > { %436 = vst [vmem:[%s888_s23] sm:$0xff] %v420_v53 }
  0xea   : > { %440 = vst [vmem:[%s888_s23 + $0x20] sm:$0xff] %v424_v54  ;;  %v396_v57 = vpop.f32.mrf.mxu2  ;;  %v408_v58 = vpop.f32.mrf.mxu3 }
  0xeb   : > { %v428_v59 = vadd.f32 %v396_v57, %v331_v55  ;;  %v432_v60 = vadd.f32 %v408_v58, %v335_v56 }
  0xed   : > { %444 = vst [vmem:[%s888_s23 + $0x40] sm:$0xff] %v428_v59 }
  0xee   : > { %448 = vst [vmem:[%s888_s23 + $0x60] sm:$0xff] %v432_v60  ;;  %v375_v63 = vpop.f32.mrf.mxu0  ;;  %v387_v0 = vpop.f32.mrf.mxu1 }
  0xef   : > { %v421_v1 = vadd.f32 %v375_v63, %v324_v61  ;;  %v425_v2 = vadd.f32 %v387_v0, %v328_v62 }
  0xf1   : > { %437 = vst [vmem:[%s888_s23 + $0x8] sm:$0xff] %v421_v1 }
  0xf2   : > { %441 = vst [vmem:[%s888_s23 + $0x28] sm:$0xff] %v425_v2  ;;  %v399_v5 = vpop.f32.mrf.mxu2  ;;  %v411_v6 = vpop.f32.mrf.mxu3 }
  0xf3   : > { %v429_v7 = vadd.f32 %v399_v5, %v332_v3  ;;  %v433_v8 = vadd.f32 %v411_v6, %v336_v4 }
  0xf5   : > { %445 = vst [vmem:[%s888_s23 + $0x48] sm:$0xff] %v429_v7 }
  0xf6   : > { %449 = vst [vmem:[%s888_s23 + $0x68] sm:$0xff] %v433_v8  ;;  %v378_v11 = vpop.f32.mrf.mxu0  ;;  %v390_v12 = vpop.f32.mrf.mxu1 }
  0xf7   : > { %v422_v13 = vadd.f32 %v378_v11, %v325_v9  ;;  %v426_v14 = vadd.f32 %v390_v12, %v329_v10 }
  0xf9   : > { %438 = vst [vmem:[%s888_s23 + $0x10] sm:$0xff] %v422_v13 }
  0xfa   : > { %442 = vst [vmem:[%s888_s23 + $0x30] sm:$0xff] %v426_v14  ;;  %v402_v17 = vpop.f32.mrf.mxu2  ;;  %v414_v18 = vpop.f32.mrf.mxu3 }
  0xfb   : > { %v430_v19 = vadd.f32 %v402_v17, %v333_v15  ;;  %v434_v20 = vadd.f32 %v414_v18, %v337_v16 }
  0xfd   : > { %446 = vst [vmem:[%s888_s23 + $0x50] sm:$0xff] %v430_v19 }
  0xfe   : > { %450 = vst [vmem:[%s888_s23 + $0x70] sm:$0xff] %v434_v20  ;;  %v381_v23 = vpop.f32.mrf.mxu0  ;;  %v393_v24 = vpop.f32.mrf.mxu1 }
  0xff   : > { %v423_v25 = vadd.f32 %v381_v23, %v326_v21  ;;  %v427_v26 = vadd.f32 %v393_v24, %v330_v22 }
 0x101   : > { %439 = vst [vmem:[%s888_s23 + $0x18] sm:$0xff] %v423_v25 }
 0x102   : > { %443 = vst [vmem:[%s888_s23 + $0x38] sm:$0xff] %v427_v26  ;;  %v405_v29 = vpop.f32.mrf.mxu2  ;;  %v417_v30 = vpop.f32.mrf.mxu3  ;;  %455 = sbr.rel (%p616_p12) target bundleno = 285 (0x11d), region = 78 }
 0x103   : > { %v431_v31 = vadd.f32 %v405_v29, %v334_v27  ;;  %v435_v32 = vadd.f32 %v417_v30, %v338_v28 }
 0x105   : > { %447 = vst [vmem:[%s888_s23 + $0x58] sm:$0xff] %v431_v31 }
 0x106   : > { %451 = vst [vmem:[%s888_s23 + $0x78] sm:$0xff] %v435_v32 }
 0x107   : > { %v456_v33 = vld [vmem:[%s888_s23] sm:$0xff]  ;;  %v457_v35 = vld [vmem:[%s888_s23 + $0x8] sm:$0xff]  ;;  %v458_v36 = vld [vmem:[%s888_s23 + $0x10] sm:$0xff] }
 0x108   : > { %v725_v34 = vld [vmem:[%s1038_s2] ss:$0 sm:$0xff]  ;;  %v459_v37 = vld [vmem:[%s888_s23 + $0x18] sm:$0xff]  ;;  %v461_v43 = vld [vmem:[%s888_s23 + $0x28] sm:$0xff] }
 0x109   : > { %v476_v38 = vadd.f32 %v725_v34, %v456_v33  ;;  %v477_v39 = vadd.f32 %v725_v34, %v457_v35  ;;  %v478_v40 = vadd.f32 %v725_v34, %v458_v36  ;;  %v479_v41 = vadd.f32 %v725_v34, %v459_v37  ;;  %v460_v42 = vld [vmem:[%s888_s23 + $0x20] sm:$0xff]  ;;  %v462_v44 = vld [vmem:[%s888_s23 + $0x30] sm:$0xff]  ;;  %v463_v47 = vld [vmem:[%s888_s23 + $0x38] sm:$0xff] }
 0x10a   : > { %v480_v45 = vadd.f32 %v725_v34, %v460_v42  ;;  %v481_v46 = vadd.f32 %v725_v34, %v461_v43  ;;  %v464_v48 = vld [vmem:[%s888_s23 + $0x40] sm:$0xff]  ;;  %v482_v52 = vadd.f32 %v725_v34, %v462_v44  ;;  %v465_v53 = vld [vmem:[%s888_s23 + $0x48] sm:$0xff]  ;;  %v483_v55 = vadd.f32 %v725_v34, %v463_v47  ;;  %v466_v56 = vld [vmem:[%s888_s23 + $0x50] sm:$0xff] }
 0x10b   : > { %v492_v49 = vmax.f32 %v476_v38, 0.0  ;;  %v493_v50 = vmax.f32 %v477_v39, 0.0  ;;  %v494_v51 = vmax.f32 %v478_v40, 0.0  ;;  %v495_v54 = vmax.f32 %v479_v41, 0.0  ;;  %v468_v62 = vld [vmem:[%s888_s23 + $0x60] sm:$0xff]  ;;  %v469_v1 = vld [vmem:[%s888_s23 + $0x68] sm:$0xff] }
 0x10c   : > { %v496_v57 = vmax.f32 %v480_v45, 0.0  ;;  %v484_v58 = vadd.f32 %v725_v34, %v464_v48  ;;  %v467_v59 = vld [vmem:[%s888_s23 + $0x58] sm:$0xff]  ;;  %v497_v60 = vmax.f32 %v481_v46, 0.0  ;;  %v485_v61 = vadd.f32 %v725_v34, %v465_v53  ;;  %v470_v4 = vld [vmem:[%s888_s23 + $0x70] sm:$0xff] }
 0x10d   : > { %508 = vst [vmem:[%s888_s23] sm:$0xff] %v492_v49  ;;  %v498_v63 = vmax.f32 %v482_v52, 0.0  ;;  %v486_v0 = vadd.f32 %v725_v34, %v466_v56  ;;  %v499_v2 = vmax.f32 %v483_v55, 0.0  ;;  %v487_v3 = vadd.f32 %v725_v34, %v467_v59  ;;  %v471_v7 = vld [vmem:[%s888_s23 + $0x78] sm:$0xff] }
 0x10e   : > { %509 = vst [vmem:[%s888_s23 + $0x8] sm:$0xff] %v493_v50  ;;  %v500_v5 = vmax.f32 %v484_v58, 0.0  ;;  %v488_v6 = vadd.f32 %v725_v34, %v468_v62  ;;  %v501_v8 = vmax.f32 %v485_v61, 0.0  ;;  %v489_v9 = vadd.f32 %v725_v34, %v469_v1 }
 0x10f   : > { %510 = vst [vmem:[%s888_s23 + $0x10] sm:$0xff] %v494_v51  ;;  %v502_v10 = vmax.f32 %v486_v0, 0.0  ;;  %v490_v11 = vadd.f32 %v725_v34, %v470_v4  ;;  %v503_v12 = vmax.f32 %v487_v3, 0.0  ;;  %v491_v13 = vadd.f32 %v725_v34, %v471_v7 }
 0x110   : > { %511 = vst [vmem:[%s888_s23 + $0x18] sm:$0xff] %v495_v54  ;;  %v504_v14 = vmax.f32 %v488_v6, 0.0  ;;  %v505_v15 = vmax.f32 %v489_v9, 0.0 }
 0x111   : > { %512 = vst [vmem:[%s888_s23 + $0x20] sm:$0xff] %v496_v57  ;;  %v506_v16 = vmax.f32 %v490_v11, 0.0  ;;  %v507_v17 = vmax.f32 %v491_v13, 0.0 }
 0x112   : > { %513 = vst [vmem:[%s888_s23 + $0x28] sm:$0xff] %v497_v60 }
 0x113   : > { %514 = vst [vmem:[%s888_s23 + $0x30] sm:$0xff] %v498_v63 }
 0x114   : > { %515 = vst [vmem:[%s888_s23 + $0x38] sm:$0xff] %v499_v2 }
 0x115   : > { %516 = vst [vmem:[%s888_s23 + $0x40] sm:$0xff] %v500_v5 }
 0x116   : > { %517 = vst [vmem:[%s888_s23 + $0x48] sm:$0xff] %v501_v8 }
 0x117   : > { %518 = vst [vmem:[%s888_s23 + $0x50] sm:$0xff] %v502_v10 }
 0x118   : > { %519 = vst [vmem:[%s888_s23 + $0x58] sm:$0xff] %v503_v12 }
 0x119   : > { %520 = vst [vmem:[%s888_s23 + $0x60] sm:$0xff] %v504_v14 }
 0x11a   : > { %521 = vst [vmem:[%s888_s23 + $0x68] sm:$0xff] %v505_v15 }
 0x11b   : > { %522 = vst [vmem:[%s888_s23 + $0x70] sm:$0xff] %v506_v16 }
 0x11c   : > { %523 = vst [vmem:[%s888_s23 + $0x78] sm:$0xff] %v507_v17 }
 0x11d PF: > { %s13_s18 = sadd.s32 1, %s780_s18   ;;  %s1040_s12 = smov %s760_s13 }
 0x11e   : > { %p10_p13 = scmp.ge.s32.totalorder %s13_s18, 6   ;;  %s1041_s13 = smov %s854_s25 }
 0x11f   : > { %s1042_s14 = smov %s772_s16  ;;  %s1043_s15 = smov %s776_s17 }
 0x120   : > { %s1044_s16 = smov %s1047_s19  ;;  %s1045_s17 = smov %s1051_s20 }
 0x121   :  { %12 = sbr.rel (!%p10_p13) target bundleno = 4 (0x4), region = 114 }

</bundles_post_ra>
